<compile_context>
chip_gen: v7x
topology: tpu7x:2x2x1
jax: 0.10.0
libtpu: 0.0.40
codegen_flags: <defaults>
</compile_context>

<pallas_src>
import functools

import jax
import jax.numpy as jnp
import numpy as np
from jax import lax
from jax.experimental import pallas as pl
from jax.experimental.pallas import tpu as pltpu


# ----------------------------------------------------------------------------
# Kernel 1: fused concat + conv1x1 + ReLU + SE global-average-pool (channel sum)
# ----------------------------------------------------------------------------
def _conv1x1_relu_pool_kernel(cls_ref, seg_ref, w_ref, b_ref, y_ref, sum_ref,
                              acc_ref):
    # cls_ref/seg_ref: (1, C, ts)   w_ref: (C, 2C)   b_ref: (C, 1)
    # y_ref: (1, C, ts)             sum_ref: (1, 1, C)   acc_ref: (1, C) scratch
    s = pl.program_id(1)

    # Fused concat: one MXU dot with K = 2C instead of two K = C dots + add.
    x = jnp.concatenate([cls_ref[0], seg_ref[0]], axis=0)          # (2C, ts)
    y = jnp.dot(w_ref[...], x, preferred_element_type=jnp.float32)  # (C, ts)
    y = jnp.maximum(y + b_ref[...], 0.0)
    y_ref[...] = y[None].astype(y_ref.dtype)

    # SE pooling: accumulate the channel sum in a VMEM scratch, write once.
    @pl.when(s == 0)
    def _():
        acc_ref[...] = jnp.zeros_like(acc_ref)

    acc_ref[...] += jnp.sum(y, axis=1)[None, :]

    @pl.when(s == pl.num_programs(1) - 1)
    def _():
        sum_ref[...] = acc_ref[...][None]


# ----------------------------------------------------------------------------
# Kernel 2: SE-gating + conv3x3x3 (halo-tiled along D) + BN(eval) + ReLU
# ----------------------------------------------------------------------------
def _se_conv3x3_bn_relu_kernel(prev_ref, cen_ref, next_ref, mask_ref, gate_ref,
                               w_ref, scale_ref, shift_ref, o_ref,
                               *, TD, HW, W, q):
    # prev_ref/next_ref: (1, C, q*HW)  halo blocks (only 1 plane of each used)
    # cen_ref:           (1, C, TD*HW) center planes of this depth tile
    # mask_ref:          (9, (TD+2)*HW) per-(dh,dw) SAME-padding masks (tiled)
    # gate_ref:          (1, C, 1)      SE gate for this batch element
    # w_ref:             (3, C, 9C)     conv weights stacked per kd, j=kh*3+kw
    # scale_ref/shift_ref: (C, 1)       BN(eval) affine with conv bias folded in
    # o_ref:             (1, C, TD*HW)
    t = pl.program_id(1)
    n_t = pl.num_programs(1)
    C = cen_ref.shape[1]
    Sw = (TD + 2) * HW

    # Halo planes: last plane of the prev block, first plane of the next block.
    prev = prev_ref[0][:, (q - 1) * HW:].astype(jnp.float32)        # (C, HW)
    nxt = next_ref[0][:, :HW].astype(jnp.float32)                   # (C, HW)
    # Volume-boundary halos act as SAME zero padding along D.
    prev = jnp.where(t > 0, prev, jnp.zeros_like(prev))
    nxt = jnp.where(t < n_t - 1, nxt, jnp.zeros_like(nxt))
    center = cen_ref[0].astype(jnp.float32)                         # (C, TD*HW)

    # SE gate folded into the input channels (exactly equivalent to gating y).
    gate = gate_ref[0]                                              # (C, 1)
    win = jnp.concatenate([prev, center, nxt], axis=1) * gate       # (C, Sw)

    # Build the 9 in-plane taps (rolled + masked) stacked along c_in.
    masks = mask_ref[...]                                           # (9, Sw)
    parts = []
    j = 0
    for dh in (-1, 0, 1):
        for dw in (-1, 0, 1):
            shift = dh * W + dw
            src = win if shift == 0 else pltpu.roll(
                win, shift=(-shift) % Sw, axis=1)
            if shift != 0:
                src = src * masks[j]
            parts.append(src)
            j += 1
    stack = jnp.concatenate(parts, axis=0)                          # (9C, Sw)

    # 3 fat dots (K = 9C), one per kd plane of the window.
    acc = None
    for kd in range(3):
        part = jnp.dot(w_ref[kd], stack[:, kd * HW: kd * HW + TD * HW],
                       preferred_element_type=jnp.float32)
        acc = part if acc is None else acc + part

    out = jnp.maximum(acc * scale_ref[...] + shift_ref[...], 0.0)
    o_ref[...] = out[None].astype(o_ref.dtype)


# ----------------------------------------------------------------------------
# Tiling / budget helpers
# ----------------------------------------------------------------------------
def _vmem_limit_bytes():
    cap = 64 * 1024 * 1024
    try:
        cap = int(pltpu.get_tpu_info().vmem_capacity_bytes)
    except Exception:
        pass
    # ~3/4 of physical VMEM: 96 MiB on 128-MiB parts, 48 MiB on v7x.
    return max((cap * 3) // 4, 32 * 1024 * 1024)


def _pick_flat_tile(S, C, budget_bytes):
    """Largest lane-dense spatial tile dividing S within a byte budget."""
    # ~6 buffered copies of a (C, ts) f32 tile (2 ins + 1 out, double-buffered).
    cap = max(budget_bytes // (6 * C * 4), 128)
    if S <= cap:
        return S
    start = (min(cap, S) // 128) * 128
    for ts in range(start, 0, -128):
        if S % ts == 0:
            return ts
    return S


def _halo_quantum(HW, D):
    """Smallest halo block (in planes) whose lane width is 128-aligned."""
    q = 1
    while (q * HW) % 128 != 0 and q < D:
        q += 1
    if (q * HW) % 128 != 0 or D % q != 0:
        q = D  # degenerate fallback: halo block == full volume
    return q


def _pick_depth_tile(D, HW, C, q, budget_bytes, y_itemsize, max_depth_tile):
    """Largest depth tile TD (multiple of q, dividing D) within a byte budget."""
    def est(td):
        sw = (td + 2) * HW
        stack = 9 * C * sw * 4                    # stacked taps (f32)
        win = C * sw * 4                          # gated window (f32)
        io = 2 * C * td * HW * (y_itemsize + 4)   # double-buffered center + out
        halo = 4 * C * q * HW * y_itemsize        # double-buffered halos
        acc = C * td * HW * 4
        msk = 2 * 9 * sw * 4
        return stack + win + io + halo + acc + msk

    cands = [td for td in range(1, D + 1)
             if D % td == 0 and (td % q == 0 or td == D)]
    fitting = [td for td in cands if est(td) <= budget_bytes]
    pool = fitting if fitting else cands[:1]
    if max_depth_tile is not None:
        capped = [td for td in pool if td <= max_depth_tile]
        if capped:
            pool = capped
    return max(pool)


# ----------------------------------------------------------------------------
# Forward wrapper
# ----------------------------------------------------------------------------
def jcs_combiner_forward(cls_features, seg_features, params, *,
                         y_dtype=jnp.float32, max_depth_tile=None):
    """cls_features, seg_features: (N, C, D, H, W) float32 (PyTorch NCDHW)."""
    N, C, D, H, W = cls_features.shape
    HW = H * W
    S = D * HW

    cls_flat = cls_features.reshape(N, C, S)
    seg_flat = seg_features.reshape(N, C, S)

    vmem_limit = _vmem_limit_bytes()
    budget = (vmem_limit * 3) // 5

    # ---- kernel 1: conv1x1 + ReLU + channel sum -----------------------------
    w1 = params["conv1x1_w"]                       # (C, 2C)  [cls | seg] halves
    b1 = params["conv1x1_b"].reshape(C, 1)
    ts = _pick_flat_tile(S, C, budget)

    y, chan_sum = pl.pallas_call(
        _conv1x1_relu_pool_kernel,
        out_shape=(jax.ShapeDtypeStruct((N, C, S), y_dtype),
                   jax.ShapeDtypeStruct((N, 1, C), jnp.float32)),
        grid=(N, S // ts),
        in_specs=[pl.BlockSpec((1, C, ts), lambda n, s: (n, 0, s)),
                  pl.BlockSpec((1, C, ts), lambda n, s: (n, 0, s)),
                  pl.BlockSpec((C, 2 * C), lambda n, s: (0, 0)),
                  pl.BlockSpec((C, 1), lambda n, s: (0, 0))],
        out_specs=(pl.BlockSpec((1, C, ts), lambda n, s: (n, 0, s)),
                   pl.BlockSpec((1, 1, C), lambda n, s: (n, 0, 0))),
        scratch_shapes=[pltpu.VMEM((1, C), jnp.float32)],
        compiler_params=pltpu.CompilerParams(
            dimension_semantics=("parallel", "arbitrary"),
            vmem_limit_bytes=vmem_limit),
    )(cls_flat, seg_flat, w1, b1)

    # ---- SE squeeze/excite MLP (hidden dim = C // C = 1, kept in plain JAX) --
    mean = chan_sum[:, 0, :] / float(S)                                   # (N, C)
    fc1 = jnp.maximum(mean @ params["se_w1"].T + params["se_b1"], 0.0)    # (N, 1)
    gate = jax.nn.sigmoid(fc1 @ params["se_w2"].T + params["se_b2"])      # (N, C)

    # ---- kernel 2 setup ------------------------------------------------------
    # conv3x3 weights stacked per kd: (3, C_out, 9*C_in), c_in blocks j=kh*3+kw.
    w3 = jnp.transpose(params["conv3x3_w"], (2, 0, 3, 4, 1)).reshape(3, C, 9 * C)

    eps = 1e-5
    bn_scale = params["bn_gamma"] / jnp.sqrt(params["bn_var"] + eps)
    bn_shift = params["bn_beta"] - params["bn_mean"] * bn_scale
    scale = bn_scale.reshape(C, 1)
    shift = (params["conv3x3_b"] * bn_scale + bn_shift).reshape(C, 1)

    q = _halo_quantum(HW, D)
    TD = _pick_depth_tile(D, HW, C, q, budget, jnp.dtype(y_dtype).itemsize,
                          max_depth_tile)
    td_q = TD // q
    Dq = D // q

    # Per-(dh,dw) SAME-padding masks over one plane, tiled over the TD+2 window.
    hh = jnp.arange(H, dtype=jnp.int32)[:, None]
    ww = jnp.arange(W, dtype=jnp.int32)[None, :]
    mrows = []
    for dh in (-1, 0, 1):
        for dw in (-1, 0, 1):
            ok = ((hh + dh >= 0) & (hh + dh < H) &
                  (ww + dw >= 0) & (ww + dw < W))
            mrows.append(ok.reshape(HW))
    mask_plane = jnp.stack(mrows, axis=0).astype(jnp.float32)       # (9, HW)
    mask_win = jnp.tile(mask_plane, (1, TD + 2))                    # (9, (TD+2)*HW)

    kernel2 = functools.partial(_se_conv3x3_bn_relu_kernel,
                                TD=TD, HW=HW, W=W, q=q)
    out = pl.pallas_call(
        kernel2,
        out_shape=jax.ShapeDtypeStruct((N, C, S), jnp.float32),
        grid=(N, D // TD),
        in_specs=[
            # prev halo: q planes ending at global plane t*TD - 1 (clamped).
            pl.BlockSpec((1, C, q * HW),
                         lambda n, t: (n, 0, jnp.maximum(t * td_q - 1, 0))),
            # center: TD planes starting at global plane t*TD.
            pl.BlockSpec((1, C, TD * HW), lambda n, t: (n, 0, t)),
            # next halo: q planes starting at global plane (t+1)*TD (clamped).
            pl.BlockSpec((1, C, q * HW),
                         lambda n, t: (n, 0, jnp.minimum((t + 1) * td_q, Dq - 1))),
            pl.BlockSpec((9, (TD + 2) * HW), lambda n, t: (0, 0)),
            pl.BlockSpec((1, C, 1), lambda n, t: (n, 0, 0)),
            pl.BlockSpec((3, C, 9 * C), lambda n, t: (0, 0, 0)),
            pl.BlockSpec((C, 1), lambda n, t: (0, 0)),
            pl.BlockSpec((C, 1), lambda n, t: (0, 0)),
        ],
        out_specs=pl.BlockSpec((1, C, TD * HW), lambda n, t: (n, 0, t)),
        compiler_params=pltpu.CompilerParams(
            dimension_semantics=("parallel", "parallel"),
            vmem_limit_bytes=vmem_limit),
    )(y, y, y, mask_win, gate.reshape(N, C, 1), w3, scale, shift)

    return out.reshape(N, C, D, H, W)


# ----------------------------------------------------------------------------
# Parameters & pure-JAX reference
# ----------------------------------------------------------------------------
def init_params(key, C):
    keys = jax.random.split(key, 8)

    def nrm(k, shape, s=0.1):
        return s * jax.random.normal(k, shape, dtype=jnp.float32)

    return {
        # Conv3d(2C, C, 1): torch (C_out, 2C_in, 1,1,1) squeezed -> (C_out, 2C_in)
        "conv1x1_w": nrm(keys[0], (C, 2 * C)),
        "conv1x1_b": nrm(keys[1], (C,)),
        # SEBlock(C, reduction=C): Linear(C, 1), Linear(1, C)
        "se_w1": nrm(keys[2], (1, C)),
        "se_b1": nrm(keys[3], (1,)),
        "se_w2": nrm(keys[4], (C, 1)),
        "se_b2": nrm(keys[5], (C,)),
        # Conv3d(C, C, 3, pad=1): torch OIDHW
        "conv3x3_w": nrm(keys[6], (C, C, 3, 3, 3)),
        "conv3x3_b": nrm(keys[7], (C,)),
        # BatchNorm3d buffers (eval-mode defaults)
        "bn_gamma": jnp.ones((C,), jnp.float32),
        "bn_beta": jnp.zeros((C,), jnp.float32),
        "bn_mean": jnp.zeros((C,), jnp.float32),
        "bn_var": jnp.ones((C,), jnp.float32),
    }


def reference_forward(cls_features, seg_features, params):
    """Plain-JAX reference reproducing the PyTorch forward (eval-mode BN)."""
    x = jnp.concatenate([cls_features, seg_features], axis=1)     # (N, 2C, D, H, W)
    y = jnp.einsum('oc,ncdhw->nodhw', params["conv1x1_w"], x)
    y = jnp.maximum(y + params["conv1x1_b"][None, :, None, None, None], 0.0)
    mean = jnp.mean(y, axis=(2, 3, 4))                            # (N, C)
    fc1 = jnp.maximum(mean @ params["se_w1"].T + params["se_b1"], 0.0)
    gate = jax.nn.sigmoid(fc1 @ params["se_w2"].T + params["se_b2"])
    yg = y * gate[:, :, None, None, None]
    z = lax.conv_general_dilated(
        yg, params["conv3x3_w"], window_strides=(1, 1, 1), padding="SAME",
        dimension_numbers=("NCDHW", "OIDHW", "NCDHW"))
    z = z + params["conv3x3_b"][None, :, None, None, None]
    eps = 1e-5
    bn_scale = params["bn_gamma"] / jnp.sqrt(params["bn_var"] + eps)
    bn_shift = params["bn_beta"] - params["bn_mean"] * bn_scale
    z = jnp.maximum(z * bn_scale[None, :, None, None, None]
                    + bn_shift[None, :, None, None, None], 0.0)
    return z


if __name__ == "__main__":
    key = jax.random.PRNGKey(0)
    kc, ks, kp = jax.random.split(key, 3)
    N, C, D, H, W = 2, 8, 4, 16, 16
    cls_features = jax.random.normal(kc, (N, C, D, H, W), dtype=jnp.float32)
    seg_features = jax.random.normal(ks, (N, C, D, H, W), dtype=jnp.float32)
    params = init_params(kp, C)

    ref = jax.block_until_ready(
        reference_forward(cls_features, seg_features, params))

    # Default config (byte-budgeted tiles; depth tile usually = D at this size).
    fwd = jax.jit(jcs_combiner_forward)
    out = jax.block_until_ready(fwd(cls_features, seg_features, params))
    assert out.shape == (N, C, D, H, W)
    np.testing.assert_allclose(np.asarray(out), np.asarray(ref),
                               rtol=1e-4, atol=1e-4)

    # Force halo tiling along D (TD=2 < D) to exercise the halo path.
    fwd_halo = jax.jit(functools.partial(jcs_combiner_forward, max_depth_tile=2))
    out_halo = jax.block_until_ready(fwd_halo(cls_features, seg_features, params))
    np.testing.assert_allclose(np.asarray(out_halo), np.asarray(ref),
                               rtol=1e-4, atol=1e-4)

    # bf16 intermediate HBM stream (accumulation stays f32): loose tolerance.
    fwd_bf16 = jax.jit(functools.partial(jcs_combiner_forward,
                                         y_dtype=jnp.bfloat16, max_depth_tile=2))
    out_bf16 = jax.block_until_ready(fwd_bf16(cls_features, seg_features, params))
    np.testing.assert_allclose(np.asarray(out_bf16), np.asarray(ref),
                               rtol=5e-2, atol=5e-2)

    print("KERNEL_OK")
</pallas_src>

<mosaic_0001>
module attributes {stable_mosaic.version = 11 : i64} {
  func.func @_conv1x1_relu_pool_kernel(%arg0: i32, %arg1: i32, %arg2: memref<1x8x1024xf32, #tpu.memory_space<vmem>>, %arg3: memref<1x8x1024xf32, #tpu.memory_space<vmem>>, %arg4: memref<8x16xf32, #tpu.memory_space<vmem>>, %arg5: memref<8x1xf32, #tpu.memory_space<vmem>>, %arg6: memref<1x8x1024xf32, #tpu.memory_space<vmem>>, %arg7: memref<1x1x8xf32, #tpu.memory_space<vmem>>, %arg8: memref<1x8xf32, #tpu.memory_space<vmem>>) attributes {dimension_semantics = [#tpu.dimension_semantics<parallel>, #tpu.dimension_semantics<arbitrary>], iteration_bounds = array<i64: 2, 1>, scalar_prefetch = 0 : i64, scratch_operands = 1 : i64, tpu.core_type = #tpu.core_type<tc>, window_params = [{transform_indices = @transform_0, window_bounds = array<i64: 1, 8, 1024>}, {transform_indices = @transform_1, window_bounds = array<i64: 1, 8, 1024>}, {pipeline_mode = #tpu.pipeline_mode<synchronous>, transform_indices = @transform_2, window_bounds = array<i64: 8, 16>}, {pipeline_mode = #tpu.pipeline_mode<synchronous>, transform_indices = @transform_3, window_bounds = array<i64: 8, 1>}, {transform_indices = @transform_4, window_bounds = array<i64: 1, 8, 1024>}, {transform_indices = @transform_5, window_bounds = array<i64: 1, 1, 8>}]} {
    %c0 = arith.constant 0 : index
    %c0_0 = arith.constant 0 : index
    %c0_1 = arith.constant 0 : index
    %0 = vector.load %arg2[%c0, %c0_0, %c0_1] : memref<1x8x1024xf32, #tpu.memory_space<vmem>>, vector<1x8x1024xf32>
    %1 = vector.shape_cast %0 : vector<1x8x1024xf32> to vector<8x1024xf32>
    %c0_2 = arith.constant 0 : index
    %c0_3 = arith.constant 0 : index
    %c0_4 = arith.constant 0 : index
    %2 = vector.load %arg3[%c0_2, %c0_3, %c0_4] : memref<1x8x1024xf32, #tpu.memory_space<vmem>>, vector<1x8x1024xf32>
    %3 = vector.shape_cast %2 : vector<1x8x1024xf32> to vector<8x1024xf32>
    %4 = tpu.concatenate %1, %3 in 0 : vector<8x1024xf32>, vector<8x1024xf32> -> vector<16x1024xf32>
    %c0_5 = arith.constant 0 : index
    %c0_6 = arith.constant 0 : index
    %5 = vector.load %arg4[%c0_5, %c0_6] : memref<8x16xf32, #tpu.memory_space<vmem>>, vector<8x16xf32>
    %cst = arith.constant dense<0.000000e+00> : vector<8x1024xf32>
    %6 = tpu.matmul %5, %4, %cst {dimension_numbers = #tpu.dot_dimension_numbers<[1], [0], [0], [1], [0, 0, 1, 1], [], []>} : vector<8x16xf32>, vector<16x1024xf32>, vector<8x1024xf32> -> vector<8x1024xf32>
    %c0_7 = arith.constant 0 : index
    %c0_8 = arith.constant 0 : index
    %7 = vector.load %arg5[%c0_7, %c0_8] : memref<8x1xf32, #tpu.memory_space<vmem>>, vector<8x1xf32>
    %8 = vector.broadcast %7 : vector<8x1xf32> to vector<8x1024xf32>
    %9 = arith.addf %6, %8 : vector<8x1024xf32>
    %cst_9 = arith.constant 0.000000e+00 : f32
    %10 = vector.broadcast %cst_9 : f32 to vector<8x1024xf32>
    %11 = arith.maximumf %9, %10 : vector<8x1024xf32>
    %12 = vector.shape_cast %11 : vector<8x1024xf32> to vector<1x8x1024xf32>
    %c0_10 = arith.constant 0 : index
    %c0_11 = arith.constant 0 : index
    %c0_12 = arith.constant 0 : index
    %13 = vector.load %arg6[%c0_10, %c0_11, %c0_12] : memref<1x8x1024xf32, #tpu.memory_space<vmem>>, vector<1x8x1024xf32>
    tpu.vector_store %arg6[%c0_10, %c0_11, %c0_12], %12 {strides = array<i32>} : memref<1x8x1024xf32, #tpu.memory_space<vmem>>, vector<1x8x1024xf32>,
    %c0_i32 = arith.constant 0 : i32
    %14 = arith.cmpi eq, %arg1, %c0_i32 : i32
    %15 = arith.extui %14 : i1 to i32
    %c0_i32_13 = arith.constant 0 : i32
    %16 = arith.cmpi ne, %15, %c0_i32_13 : i32
    scf.if %16 {
      %cst_21 = arith.constant 0.000000e+00 : f32
      %25 = vector.broadcast %cst_21 : f32 to vector<1x8xf32>
      %c0_22 = arith.constant 0 : index
      %c0_23 = arith.constant 0 : index
      %26 = vector.load %arg8[%c0_22, %c0_23] : memref<1x8xf32, #tpu.memory_space<vmem>>, vector<1x8xf32>
      tpu.vector_store %arg8[%c0_22, %c0_23], %25 {strides = array<i32>} : memref<1x8xf32, #tpu.memory_space<vmem>>, vector<1x8xf32>,
    } else {
    }
    %c0_14 = arith.constant 0 : index
    %c0_15 = arith.constant 0 : index
    %17 = vector.load %arg8[%c0_14, %c0_15] : memref<1x8xf32, #tpu.memory_space<vmem>>, vector<1x8xf32>
    %cst_16 = arith.constant dense<0.000000e+00> : vector<8xf32>
    %18 = vector.multi_reduction <add>, %11, %cst_16 [1] : vector<8x1024xf32> to vector<8xf32>
    %19 = vector.shape_cast %18 : vector<8xf32> to vector<1x8xf32>
    %20 = arith.addf %17, %19 : vector<1x8xf32>
    %c0_17 = arith.constant 0 : index
    %c0_18 = arith.constant 0 : index
    %21 = vector.load %arg8[%c0_17, %c0_18] : memref<1x8xf32, #tpu.memory_space<vmem>>, vector<1x8xf32>
    tpu.vector_store %arg8[%c0_17, %c0_18], %20 {strides = array<i32>} : memref<1x8xf32, #tpu.memory_space<vmem>>, vector<1x8xf32>,
    %c0_i32_19 = arith.constant 0 : i32
    %22 = arith.cmpi eq, %arg1, %c0_i32_19 : i32
    %23 = arith.extui %22 : i1 to i32
    %c0_i32_20 = arith.constant 0 : i32
    %24 = arith.cmpi ne, %23, %c0_i32_20 : i32
    scf.if %24 {
      %c0_21 = arith.constant 0 : index
      %c0_22 = arith.constant 0 : index
      %25 = vector.load %arg8[%c0_21, %c0_22] : memref<1x8xf32, #tpu.memory_space<vmem>>, vector<1x8xf32>
      %26 = vector.shape_cast %25 : vector<1x8xf32> to vector<1x1x8xf32>
      %c0_23 = arith.constant 0 : index
      %c0_24 = arith.constant 0 : index
      %c0_25 = arith.constant 0 : index
      %27 = vector.load %arg7[%c0_23, %c0_24, %c0_25] : memref<1x1x8xf32, #tpu.memory_space<vmem>>, vector<1x1x8xf32>
      tpu.vector_store %arg7[%c0_23, %c0_24, %c0_25], %26 {strides = array<i32>} : memref<1x1x8xf32, #tpu.memory_space<vmem>>, vector<1x1x8xf32>,
    } else {
    }
    return
  }
  func.func @transform_0(%arg0: i32, %arg1: i32) -> (i32, i32, i32) {
    %c0_i32 = arith.constant 0 : i32
    %c0_i32_0 = arith.constant 0 : i32
    return %arg0, %c0_i32, %arg1 : i32, i32, i32
  }
  func.func @transform_1(%arg0: i32, %arg1: i32) -> (i32, i32, i32) {
    %c0_i32 = arith.constant 0 : i32
    %c0_i32_0 = arith.constant 0 : i32
    return %arg0, %c0_i32, %arg1 : i32, i32, i32
  }
  func.func @transform_2(%arg0: i32, %arg1: i32) -> (i32, i32) {
    %c0_i32 = arith.constant 0 : i32
    %c0_i32_0 = arith.constant 0 : i32
    %c0_i32_1 = arith.constant 0 : i32
    return %c0_i32, %c0_i32_0 : i32, i32
  }
  func.func @transform_3(%arg0: i32, %arg1: i32) -> (i32, i32) {
    %c0_i32 = arith.constant 0 : i32
    %c0_i32_0 = arith.constant 0 : i32
    %c0_i32_1 = arith.constant 0 : i32
    return %c0_i32, %c0_i32_0 : i32, i32
  }
  func.func @transform_4(%arg0: i32, %arg1: i32) -> (i32, i32, i32) {
    %c0_i32 = arith.constant 0 : i32
    %c0_i32_0 = arith.constant 0 : i32
    return %arg0, %c0_i32, %arg1 : i32, i32, i32
  }
  func.func @transform_5(%arg0: i32, %arg1: i32) -> (i32, i32, i32) {
    %c0_i32 = arith.constant 0 : i32
    %c0_i32_0 = arith.constant 0 : i32
    %c0_i32_1 = arith.constant 0 : i32
    return %arg0, %c0_i32, %c0_i32_0 : i32, i32, i32
  }
}

module attributes {stable_mosaic.version = 11 : i64} {
  func.func @_se_conv3x3_bn_relu_kernel(%arg0: i32, %arg1: i32, %arg2: memref<1x8x256xf32, #tpu.memory_space<vmem>>, %arg3: memref<1x8x1024xf32, #tpu.memory_space<vmem>>, %arg4: memref<1x8x256xf32, #tpu.memory_space<vmem>>, %arg5: memref<9x1536xf32, #tpu.memory_space<vmem>>, %arg6: memref<1x8x1xf32, #tpu.memory_space<vmem>>, %arg7: memref<3x8x72xf32, #tpu.memory_space<vmem>>, %arg8: memref<8x1xf32, #tpu.memory_space<vmem>>, %arg9: memref<8x1xf32, #tpu.memory_space<vmem>>, %arg10: memref<1x8x1024xf32, #tpu.memory_space<vmem>>) attributes {dimension_semantics = [#tpu.dimension_semantics<parallel>, #tpu.dimension_semantics<parallel>], iteration_bounds = array<i64: 2, 1>, scalar_prefetch = 0 : i64, scratch_operands = 0 : i64, tpu.core_type = #tpu.core_type<tc>, window_params = [{transform_indices = @transform_0, window_bounds = array<i64: 1, 8, 256>}, {transform_indices = @transform_1, window_bounds = array<i64: 1, 8, 1024>}, {transform_indices = @transform_2, window_bounds = array<i64: 1, 8, 256>}, {pipeline_mode = #tpu.pipeline_mode<synchronous>, transform_indices = @transform_3, window_bounds = array<i64: 9, 1536>}, {transform_indices = @transform_4, window_bounds = array<i64: 1, 8, 1>}, {pipeline_mode = #tpu.pipeline_mode<synchronous>, transform_indices = @transform_5, window_bounds = array<i64: 3, 8, 72>}, {pipeline_mode = #tpu.pipeline_mode<synchronous>, transform_indices = @transform_6, window_bounds = array<i64: 8, 1>}, {pipeline_mode = #tpu.pipeline_mode<synchronous>, transform_indices = @transform_7, window_bounds = array<i64: 8, 1>}, {transform_indices = @transform_8, window_bounds = array<i64: 1, 8, 1024>}]} {
    %c0 = arith.constant 0 : index
    %c0_0 = arith.constant 0 : index
    %c0_1 = arith.constant 0 : index
    %0 = vector.load %arg2[%c0, %c0_0, %c0_1] : memref<1x8x256xf32, #tpu.memory_space<vmem>>, vector<1x8x256xf32>
    %1 = vector.shape_cast %0 : vector<1x8x256xf32> to vector<8x256xf32>
    %c0_2 = arith.constant 0 : index
    %c0_3 = arith.constant 0 : index
    %c0_4 = arith.constant 0 : index
    %2 = vector.load %arg4[%c0_2, %c0_3, %c0_4] : memref<1x8x256xf32, #tpu.memory_space<vmem>>, vector<1x8x256xf32>
    %3 = vector.shape_cast %2 : vector<1x8x256xf32> to vector<8x256xf32>
    %c0_i32 = arith.constant 0 : i32
    %4 = arith.cmpi sgt, %arg1, %c0_i32 : i32
    %cst = arith.constant 0.000000e+00 : f32
    %5 = vector.broadcast %cst : f32 to vector<8x256xf32>
    %6 = arith.select %4, %1, %5 : vector<8x256xf32>
    %c0_i32_5 = arith.constant 0 : i32
    %7 = arith.cmpi slt, %arg1, %c0_i32_5 : i32
    %cst_6 = arith.constant 0.000000e+00 : f32
    %8 = vector.broadcast %cst_6 : f32 to vector<8x256xf32>
    %9 = arith.select %7, %3, %8 : vector<8x256xf32>
    %c0_7 = arith.constant 0 : index
    %c0_8 = arith.constant 0 : index
    %c0_9 = arith.constant 0 : index
    %10 = vector.load %arg3[%c0_7, %c0_8, %c0_9] : memref<1x8x1024xf32, #tpu.memory_space<vmem>>, vector<1x8x1024xf32>
    %11 = vector.shape_cast %10 : vector<1x8x1024xf32> to vector<8x1024xf32>
    %c0_10 = arith.constant 0 : index
    %c0_11 = arith.constant 0 : index
    %c0_12 = arith.constant 0 : index
    %12 = vector.load %arg6[%c0_10, %c0_11, %c0_12] : memref<1x8x1xf32, #tpu.memory_space<vmem>>, vector<1x8x1xf32>
    %13 = vector.shape_cast %12 : vector<1x8x1xf32> to vector<8x1xf32>
    %14 = tpu.concatenate %6, %11, %9 in 1 : vector<8x256xf32>, vector<8x1024xf32>, vector<8x256xf32> -> vector<8x1536xf32>
    %15 = vector.broadcast %13 : vector<8x1xf32> to vector<8x1536xf32>
    %16 = arith.mulf %14, %15 : vector<8x1536xf32>
    %c0_13 = arith.constant 0 : index
    %c0_14 = arith.constant 0 : index
    %17 = vector.load %arg5[%c0_13, %c0_14] : memref<9x1536xf32, #tpu.memory_space<vmem>>, vector<9x1536xf32>
    %c17_i32 = arith.constant 17 : i32
    %18 = tpu.dynamic_rotate %16 by %c17_i32 dim 1 : vector<8x1536xf32>, i32 -> vector<8x1536xf32>
    %19 = vector.extract_strided_slice %17 {offsets = [0, 0], sizes = [1, 1536], strides = [1, 1]} : vector<9x1536xf32> to vector<1x1536xf32>
    %20 = vector.shape_cast %19 : vector<1x1536xf32> to vector<1536xf32>
    %21 = vector.shape_cast %20 : vector<1536xf32> to vector<1x1536xf32>
    %22 = vector.broadcast %21 : vector<1x1536xf32> to vector<8x1536xf32>
    %23 = arith.mulf %18, %22 : vector<8x1536xf32>
    %c16_i32 = arith.constant 16 : i32
    %24 = tpu.dynamic_rotate %16 by %c16_i32 dim 1 : vector<8x1536xf32>, i32 -> vector<8x1536xf32>
    %25 = vector.extract_strided_slice %17 {offsets = [1, 0], sizes = [1, 1536], strides = [1, 1]} : vector<9x1536xf32> to vector<1x1536xf32>
    %26 = vector.shape_cast %25 : vector<1x1536xf32> to vector<1536xf32>
    %27 = vector.shape_cast %26 : vector<1536xf32> to vector<1x1536xf32>
    %28 = vector.broadcast %27 : vector<1x1536xf32> to vector<8x1536xf32>
    %29 = arith.mulf %24, %28 : vector<8x1536xf32>
    %c15_i32 = arith.constant 15 : i32
    %30 = tpu.dynamic_rotate %16 by %c15_i32 dim 1 : vector<8x1536xf32>, i32 -> vector<8x1536xf32>
    %31 = vector.extract_strided_slice %17 {offsets = [2, 0], sizes = [1, 1536], strides = [1, 1]} : vector<9x1536xf32> to vector<1x1536xf32>
    %32 = vector.shape_cast %31 : vector<1x1536xf32> to vector<1536xf32>
    %33 = vector.shape_cast %32 : vector<1536xf32> to vector<1x1536xf32>
    %34 = vector.broadcast %33 : vector<1x1536xf32> to vector<8x1536xf32>
    %35 = arith.mulf %30, %34 : vector<8x1536xf32>
    %c1_i32 = arith.constant 1 : i32
    %36 = tpu.dynamic_rotate %16 by %c1_i32 dim 1 : vector<8x1536xf32>, i32 -> vector<8x1536xf32>
    %37 = vector.extract_strided_slice %17 {offsets = [3, 0], sizes = [1, 1536], strides = [1, 1]} : vector<9x1536xf32> to vector<1x1536xf32>
    %38 = vector.shape_cast %37 : vector<1x1536xf32> to vector<1536xf32>
    %39 = vector.shape_cast %38 : vector<1536xf32> to vector<1x1536xf32>
    %40 = vector.broadcast %39 : vector<1x1536xf32> to vector<8x1536xf32>
    %41 = arith.mulf %36, %40 : vector<8x1536xf32>
    %c1535_i32 = arith.constant 1535 : i32
    %42 = tpu.dynamic_rotate %16 by %c1535_i32 dim 1 : vector<8x1536xf32>, i32 -> vector<8x1536xf32>
    %43 = vector.extract_strided_slice %17 {offsets = [5, 0], sizes = [1, 1536], strides = [1, 1]} : vector<9x1536xf32> to vector<1x1536xf32>
    %44 = vector.shape_cast %43 : vector<1x1536xf32> to vector<1536xf32>
    %45 = vector.shape_cast %44 : vector<1536xf32> to vector<1x1536xf32>
    %46 = vector.broadcast %45 : vector<1x1536xf32> to vector<8x1536xf32>
    %47 = arith.mulf %42, %46 : vector<8x1536xf32>
    %c1521_i32 = arith.constant 1521 : i32
    %48 = tpu.dynamic_rotate %16 by %c1521_i32 dim 1 : vector<8x1536xf32>, i32 -> vector<8x1536xf32>
    %49 = vector.extract_strided_slice %17 {offsets = [6, 0], sizes = [1, 1536], strides = [1, 1]} : vector<9x1536xf32> to vector<1x1536xf32>
    %50 = vector.shape_cast %49 : vector<1x1536xf32> to vector<1536xf32>
    %51 = vector.shape_cast %50 : vector<1536xf32> to vector<1x1536xf32>
    %52 = vector.broadcast %51 : vector<1x1536xf32> to vector<8x1536xf32>
    %53 = arith.mulf %48, %52 : vector<8x1536xf32>
    %c1520_i32 = arith.constant 1520 : i32
    %54 = tpu.dynamic_rotate %16 by %c1520_i32 dim 1 : vector<8x1536xf32>, i32 -> vector<8x1536xf32>
    %55 = vector.extract_strided_slice %17 {offsets = [7, 0], sizes = [1, 1536], strides = [1, 1]} : vector<9x1536xf32> to vector<1x1536xf32>
    %56 = vector.shape_cast %55 : vector<1x1536xf32> to vector<1536xf32>
    %57 = vector.shape_cast %56 : vector<1536xf32> to vector<1x1536xf32>
    %58 = vector.broadcast %57 : vector<1x1536xf32> to vector<8x1536xf32>
    %59 = arith.mulf %54, %58 : vector<8x1536xf32>
    %c1519_i32 = arith.constant 1519 : i32
    %60 = tpu.dynamic_rotate %16 by %c1519_i32 dim 1 : vector<8x1536xf32>, i32 -> vector<8x1536xf32>
    %61 = vector.extract_strided_slice %17 {offsets = [8, 0], sizes = [1, 1536], strides = [1, 1]} : vector<9x1536xf32> to vector<1x1536xf32>
    %62 = vector.shape_cast %61 : vector<1x1536xf32> to vector<1536xf32>
    %63 = vector.shape_cast %62 : vector<1536xf32> to vector<1x1536xf32>
    %64 = vector.broadcast %63 : vector<1x1536xf32> to vector<8x1536xf32>
    %65 = arith.mulf %60, %64 : vector<8x1536xf32>
    %66 = tpu.concatenate %23, %29, %35, %41, %16, %47, %53, %59, %65 in 0 : vector<8x1536xf32>, vector<8x1536xf32>, vector<8x1536xf32>, vector<8x1536xf32>, vector<8x1536xf32>, vector<8x1536xf32>, vector<8x1536xf32>, vector<8x1536xf32>, vector<8x1536xf32> -> vector<72x1536xf32>
    %c0_15 = arith.constant 0 : index
    %c0_16 = arith.constant 0 : index
    %c0_17 = arith.constant 0 : index
    %67 = vector.load %arg7[%c0_15, %c0_16, %c0_17] : memref<3x8x72xf32, #tpu.memory_space<vmem>>, vector<1x8x72xf32>
    %68 = vector.shape_cast %67 : vector<1x8x72xf32> to vector<8x72xf32>
    %69 = vector.extract_strided_slice %66 {offsets = [0, 0], sizes = [72, 1024], strides = [1, 1]} : vector<72x1536xf32> to vector<72x1024xf32>
    %cst_18 = arith.constant dense<0.000000e+00> : vector<8x1024xf32>
    %70 = tpu.matmul %68, %69, %cst_18 {dimension_numbers = #tpu.dot_dimension_numbers<[1], [0], [0], [1], [0, 0, 1, 1], [], []>} : vector<8x72xf32>, vector<72x1024xf32>, vector<8x1024xf32> -> vector<8x1024xf32>
    %c1 = arith.constant 1 : index
    %c0_19 = arith.constant 0 : index
    %c0_20 = arith.constant 0 : index
    %71 = vector.load %arg7[%c1, %c0_19, %c0_20] : memref<3x8x72xf32, #tpu.memory_space<vmem>>, vector<1x8x72xf32>
    %72 = vector.shape_cast %71 : vector<1x8x72xf32> to vector<8x72xf32>
    %73 = vector.extract_strided_slice %66 {offsets = [0, 256], sizes = [72, 1024], strides = [1, 1]} : vector<72x1536xf32> to vector<72x1024xf32>
    %cst_21 = arith.constant dense<0.000000e+00> : vector<8x1024xf32>
    %74 = tpu.matmul %72, %73, %cst_21 {dimension_numbers = #tpu.dot_dimension_numbers<[1], [0], [0], [1], [0, 0, 1, 1], [], []>} : vector<8x72xf32>, vector<72x1024xf32>, vector<8x1024xf32> -> vector<8x1024xf32>
    %75 = arith.addf %70, %74 : vector<8x1024xf32>
    %c2 = arith.constant 2 : index
    %c0_22 = arith.constant 0 : index
    %c0_23 = arith.constant 0 : index
    %76 = vector.load %arg7[%c2, %c0_22, %c0_23] : memref<3x8x72xf32, #tpu.memory_space<vmem>>, vector<1x8x72xf32>
    %77 = vector.shape_cast %76 : vector<1x8x72xf32> to vector<8x72xf32>
    %78 = vector.extract_strided_slice %66 {offsets = [0, 512], sizes = [72, 1024], strides = [1, 1]} : vector<72x1536xf32> to vector<72x1024xf32>
    %cst_24 = arith.constant dense<0.000000e+00> : vector<8x1024xf32>
    %79 = tpu.matmul %77, %78, %cst_24 {dimension_numbers = #tpu.dot_dimension_numbers<[1], [0], [0], [1], [0, 0, 1, 1], [], []>} : vector<8x72xf32>, vector<72x1024xf32>, vector<8x1024xf32> -> vector<8x1024xf32>
    %80 = arith.addf %75, %79 : vector<8x1024xf32>
    %c0_25 = arith.constant 0 : index
    %c0_26 = arith.constant 0 : index
    %81 = vector.load %arg8[%c0_25, %c0_26] : memref<8x1xf32, #tpu.memory_space<vmem>>, vector<8x1xf32>
    %82 = vector.broadcast %81 : vector<8x1xf32> to vector<8x1024xf32>
    %83 = arith.mulf %80, %82 : vector<8x1024xf32>
    %c0_27 = arith.constant 0 : index
    %c0_28 = arith.constant 0 : index
    %84 = vector.load %arg9[%c0_27, %c0_28] : memref<8x1xf32, #tpu.memory_space<vmem>>, vector<8x1xf32>
    %85 = vector.broadcast %84 : vector<8x1xf32> to vector<8x1024xf32>
    %86 = arith.addf %83, %85 : vector<8x1024xf32>
    %cst_29 = arith.constant 0.000000e+00 : f32
    %87 = vector.broadcast %cst_29 : f32 to vector<8x1024xf32>
    %88 = arith.maximumf %86, %87 : vector<8x1024xf32>
    %89 = vector.shape_cast %88 : vector<8x1024xf32> to vector<1x8x1024xf32>
    %c0_30 = arith.constant 0 : index
    %c0_31 = arith.constant 0 : index
    %c0_32 = arith.constant 0 : index
    %90 = vector.load %arg10[%c0_30, %c0_31, %c0_32] : memref<1x8x1024xf32, #tpu.memory_space<vmem>>, vector<1x8x1024xf32>
    tpu.vector_store %arg10[%c0_30, %c0_31, %c0_32], %89 {strides = array<i32>} : memref<1x8x1024xf32, #tpu.memory_space<vmem>>, vector<1x8x1024xf32>,
    return
  }
  func.func @transform_0(%arg0: i32, %arg1: i32) -> (i32, i32, i32) {
    %c4_i32 = arith.constant 4 : i32
    %0 = arith.muli %arg1, %c4_i32 : i32
    %c1_i32 = arith.constant 1 : i32
    %1 = arith.subi %0, %c1_i32 : i32
    %c0_i32 = arith.constant 0 : i32
    %2 = arith.maxsi %1, %c0_i32 : i32
    %c0_i32_0 = arith.constant 0 : i32
    %c0_i32_1 = arith.constant 0 : i32
    return %arg0, %c0_i32_0, %2 : i32, i32, i32
  }
  func.func @transform_1(%arg0: i32, %arg1: i32) -> (i32, i32, i32) {
    %c0_i32 = arith.constant 0 : i32
    %c0_i32_0 = arith.constant 0 : i32
    return %arg0, %c0_i32, %arg1 : i32, i32, i32
  }
  func.func @transform_2(%arg0: i32, %arg1: i32) -> (i32, i32, i32) {
    %c1_i32 = arith.constant 1 : i32
    %0 = arith.addi %arg1, %c1_i32 : i32
    %c4_i32 = arith.constant 4 : i32
    %1 = arith.muli %0, %c4_i32 : i32
    %c3_i32 = arith.constant 3 : i32
    %2 = arith.minsi %1, %c3_i32 : i32
    %c0_i32 = arith.constant 0 : i32
    %c0_i32_0 = arith.constant 0 : i32
    return %arg0, %c0_i32, %2 : i32, i32, i32
  }
  func.func @transform_3(%arg0: i32, %arg1: i32) -> (i32, i32) {
    %c0_i32 = arith.constant 0 : i32
    %c0_i32_0 = arith.constant 0 : i32
    %c0_i32_1 = arith.constant 0 : i32
    return %c0_i32, %c0_i32_0 : i32, i32
  }
  func.func @transform_4(%arg0: i32, %arg1: i32) -> (i32, i32, i32) {
    %c0_i32 = arith.constant 0 : i32
    %c0_i32_0 = arith.constant 0 : i32
    %c0_i32_1 = arith.constant 0 : i32
    return %arg0, %c0_i32, %c0_i32_0 : i32, i32, i32
  }
  func.func @transform_5(%arg0: i32, %arg1: i32) -> (i32, i32, i32) {
    %c0_i32 = arith.constant 0 : i32
    %c0_i32_0 = arith.constant 0 : i32
    %c0_i32_1 = arith.constant 0 : i32
    %c0_i32_2 = arith.constant 0 : i32
    return %c0_i32, %c0_i32_0, %c0_i32_1 : i32, i32, i32
  }
  func.func @transform_6(%arg0: i32, %arg1: i32) -> (i32, i32) {
    %c0_i32 = arith.constant 0 : i32
    %c0_i32_0 = arith.constant 0 : i32
    %c0_i32_1 = arith.constant 0 : i32
    return %c0_i32, %c0_i32_0 : i32, i32
  }
  func.func @transform_7(%arg0: i32, %arg1: i32) -> (i32, i32) {
    %c0_i32 = arith.constant 0 : i32
    %c0_i32_0 = arith.constant 0 : i32
    %c0_i32_1 = arith.constant 0 : i32
    return %c0_i32, %c0_i32_0 : i32, i32
  }
  func.func @transform_8(%arg0: i32, %arg1: i32) -> (i32, i32, i32) {
    %c0_i32 = arith.constant 0 : i32
    %c0_i32_0 = arith.constant 0 : i32
    return %arg0, %c0_i32, %arg1 : i32, i32, i32
  }
}

</mosaic_0001>

<bundles_post_ra>
// kernel: jcs_combiner_forward.2
= control target key start
LH: loop header
LB: loop body
LE: loop exit
PB: predicated region body
PF: predicated region fallthrough
CT: control target
= control target key end

     0   :  { %s1018_s18 = smov 0   ;;  %s1020_s19 = smov 0   ;;  %s1089_s0 = inlined_call_operand.vmem [shape: f32[2,8,1024], index: 0, kind: input, shape index: {}]   ;;  %s1090_s1 = inlined_call_operand.vmem [shape: f32[2,8,1024], index: 1, kind: input, shape index: {}]   ;;  %s1091_s2 = inlined_call_operand.vmem [shape: f32[8,16], index: 2, kind: input, shape index: {}]   ;;  %s1092_s3 = inlined_call_operand.vmem [shape: f32[8,1], index: 3, kind: input, shape index: {}]   ;;  %s1093_s4 = inlined_call_operand.vmem [shape: f32[2,8,1024], index: 4, kind: output, shape index: {0}]   ;;  %s1094_s5 = inlined_call_operand.vmem [shape: f32[2,1,8], index: 5, kind: output, shape index: {1}]  }
   0x1   :  { %s1022_s20 = smov 0  }
   0x2 LB: > { %s28_s21 = sadd.s32 1, %s979_s19  ;;  %p900_p0 = scmp.ge.s32.totalorder %s983_s20, 1  ;;  %s983_s20 = sphi %s1022_s20, %s16_s20   ;;  %s979_s19 = sphi %s1020_s19, %s1096_s19   ;;  %s975_s18 = sphi %s1018_s18, %s1095_s18  }
   0x3   : > { %p30_p1 = scmp.ge.s32.totalorder %s28_s21, 2  ;;  %p228_p2 = scmp.lt.s32.totalorder %s983_s20, 3 }
   0x5   : > { %s1098_s21 = smov (%p30_p1, %s28_s21), 0  ;;  %p229_p3 = pnand %p900_p0, %p228_p2 }
   0x6   : > { %p277_p4 = scmp.lt.s32.totalorder (!%p229_p3), %s975_s18, 1  ;;  %vm640_vm0 = vcmask (!%p229_p3), 57344   ;;  %v985_v0 = vmov (!%p229_p3), 0.0   ;;  %v326_v1 = vld [vmem:[%s1092_s3] sm:$0xff] (!%p229_p3)  ;;  %v986_v2 = vmov (!%p229_p3), 0   ;;  %vm332_vm1 = vcmask (!%p229_p3), 130048  }
   0x7   : > { %232 = sbr.rel (%p229_p3) target bundleno = 556 (0x22c), region = 36  ;;  %400 = vmatprep.mubr.f32.mxu0 (!%p229_p3), %v985_v0  ;;  %641 = vst.msk [vmem:[#allocation2] sm:$0x1] (!%p229_p3), %vm640_vm0, %v985_v0  ;;  %471 = vmatprep.mubr.f32.mxu1 (!%p229_p3), %v985_v0  ;;  %v325_v14 = vld [vmem:[%s1091_s2] sm:$0xff] (!%p229_p3)  ;;  %v653_v60 = vlaneseq (!%p229_p3) }
   0x8   : > { %959 = vset.pattern.permute.xlu0 (!%p229_p3), %v986_v2  ;;  %960 = vset.pattern.permute.xlu1 (!%p229_p3), %v986_v2 }
   0x9   : > { %329 = vperm.xlu0 (!%p229_p3), %959, %v326_v1   ;;  %v654_v61 = vshrl.u32 (!%p229_p3), %v653_v60, 7  ;;  %v738_v62 = vand.u32 (!%p229_p3), 127, %v653_v60 }
   0xb   : > { %v741_v63 = vsub.s32 (!%p229_p3), %v738_v62, %v654_v61 }
   0xe   : > { %s1100_s18 = smov (!%p277_p4, %s975_s18), 1 }
   0xf   : > { %s1043_s24 = sshll.u32 %s1100_s18, 6  ;;  %s308_s13 = scalar_lea.vmem %s1094_s5, %s1100_s18 }
  0x10   : > { %s284_s27 = scalar_lea.vmem %s1089_s0, %s1043_s24  ;;  %s294_s30 = scalar_lea.vmem %s1090_s1, %s1043_s24 }
  0x11   : > { %v310_v3 = vld [vmem:[%s284_s27 + $0x8] sm:$0xff]  ;;  %v312_v5 = vld [vmem:[%s284_s27 + $0x18] sm:$0xff]  ;;  %v309_v8 = vld [vmem:[%s284_s27] sm:$0xff]  ;;  %s1064_s10 = scalar_lea.vmem %s1093_s4, %s1043_s24 }
  0x12   : > { %v318_v4 = vld [vmem:[%s294_s30 + $0x8] sm:$0xff]  ;;  %v320_v7 = vld [vmem:[%s294_s30 + $0x18] sm:$0xff]  ;;  %v317_v9 = vld [vmem:[%s294_s30] sm:$0xff] }
  0x13   : > { %v916_v6 = vpack.c.bf16 %v318_v4, %v310_v3  ;;  %v920_v10 = vpack.c.bf16 %v320_v7, %v312_v5  ;;  %v918_v11 = vpack.c.bf16 %v317_v9, %v309_v8  ;;  %v311_v12 = vld [vmem:[%s284_s27 + $0x10] sm:$0xff]  ;;  %v314_v15 = vld [vmem:[%s284_s27 + $0x28] sm:$0xff]  ;;  %v316_v18 = vld [vmem:[%s284_s27 + $0x38] sm:$0xff]  ;;  %v655_v3 = vsub.s32 0, %v654_v61 }
  0x14   : > { %v319_v13 = vld [vmem:[%s294_s30 + $0x10] sm:$0xff]  ;;  %v322_v17 = vld [vmem:[%s294_s30 + $0x28] sm:$0xff]  ;;  %v324_v19 = vld [vmem:[%s294_s30 + $0x38] sm:$0xff]  ;;  %v659_v4 = vsub.s32 1, %v654_v61  ;;  %v663_v5 = vsub.s32 2, %v654_v61  ;;  %v671_v7 = vsub.s32 4, %v654_v61 }
  0x15   : > { %917 = vmatprep.subr.bf16.mxu0 %v916_v6  ;;  %v922_v16 = vpack.c.bf16 %v319_v13, %v311_v12  ;;  %921 = vmatprep.subr.bf16.mxu1 %v920_v10  ;;  %v924_v20 = vpack.c.bf16 %v322_v17, %v314_v15  ;;  %v928_v21 = vpack.c.bf16 %v324_v19, %v316_v18  ;;  %v313_v22 = vld [vmem:[%s284_s27 + $0x20] sm:$0xff]  ;;  %v315_v24 = vld [vmem:[%s284_s27 + $0x30] sm:$0xff]  ;;  %v667_v6 = vsub.s32 3, %v654_v61 }
  0x16   : > { %919 = vmatpush1.bf16.msra.mxu0 %v918_v11  ;;  %v321_v23 = vld [vmem:[%s294_s30 + $0x20] sm:$0xff]  ;;  %v323_v26 = vld [vmem:[%s294_s30 + $0x30] sm:$0xff]  ;;  %v675_v8 = vsub.s32 5, %v654_v61  ;;  %v679_v9 = vsub.s32 6, %v654_v61  ;;  %v683_v10 = vsub.s32 7, %v654_v61 }
  0x17   : > { %923 = vmatpush1.bf16.msra.mxu1 %v922_v16  ;;  %v926_v25 = vpack.c.bf16 %v321_v23, %v313_v22  ;;  %925 = vmatprep.subr.bf16.mxu0 %v924_v20  ;;  %v930_v27 = vpack.c.bf16 %v323_v26, %v315_v24 }
  0x18   : > { %929 = vmatprep.subr.bf16.mxu1 %v928_v21 }
  0x19   : > { %907 = vmatmul.mubr.msk.f32.vlgmr.msra.gmra.mrb[0].mxu0 %vm332_vm1, %v325_v14 }
  0x1a   : > { %908 = vmatmul.mubr.msk.f32.vlgmr.msra.gmra.mrb[0].mxu1 %vm332_vm1, %v325_v14  ;;  %927 = vmatpush1.bf16.msra.mxu0 %v926_v25 }
  0x1b   : > { %931 = vmatpush1.bf16.msra.mxu1 %v930_v27  ;;  %542 = vmatprep.mubr.f32.mxu0 %v985_v0 }
  0x1c   : > { %613 = vmatprep.mubr.f32.mxu1 %v985_v0  ;;  %v987_v0 = vmov 1966171168  }
  0x1d   : > { %909 = vmatmul.mubr.msk.f32.vlgmr.msra.gmra.mrb[2].mxu0 %vm332_vm1, %v325_v14  ;;  %v690_v1 = vunpack.c.l.s4 %v987_v0 }
  0x1e   : > { %910 = vmatmul.mubr.msk.f32.vlgmr.msra.gmra.mrb[2].mxu1 %vm332_vm1, %v325_v14 }
  0x1f   : > { %v691_v2 = vunpack.c.0.s8 %v690_v1 }
  0x21   : > { %v694_v12 = vsub.s32 %v691_v2, %v654_v61 }
  0x88   : > { %v330_v28 = vpop.permute.xlu0 %329 }
  0xec   : > { %v402_v29 = vpop.f32.mrb[0].mxu0 }
  0xed   : > { %v403_v30 = vadd.f32 %v402_v29, %v330_v28  ;;  %v473_v31 = vpop.f32.mrb[0].mxu1  ;;  %v404_v32 = vpop.f32.mrb[1].mxu0 }
  0xee   : > { %v474_v33 = vadd.f32 %v473_v31, %v330_v28  ;;  %v405_v34 = vadd.f32 %v404_v32, %v330_v28  ;;  %v475_v35 = vpop.f32.mrb[1].mxu1 }
  0xef   : > { %v620_v36 = vmax.f32 %v403_v30, 0.0  ;;  %v476_v37 = vadd.f32 %v475_v35, %v330_v28 }
  0xf0   : > { %v622_v38 = vmax.f32 %v474_v33, 0.0  ;;  %v621_v39 = vmax.f32 %v405_v34, 0.0  ;;  %v544_v40 = vpop.f32.mrb[2].mxu0 }
  0xf1   : > { %628 = vst [vmem:[%s1064_s10] sm:$0xff] %v620_v36  ;;  %v623_v41 = vmax.f32 %v476_v37, 0.0  ;;  %v545_v42 = vadd.f32 %v544_v40, %v330_v28  ;;  %v615_v43 = vpop.f32.mrb[2].mxu1  ;;  %v546_v44 = vpop.f32.mrb[3].mxu0  ;;  %v642_v37 = vld [vmem:[#allocation2] sm:$0x1] }
  0xf2   : > { %630 = vst [vmem:[%s1064_s10 + $0x10] sm:$0xff] %v622_v38  ;;  %629 = vst [vmem:[%s1064_s10 + $0x8] sm:$0xff] %v621_v39  ;;  %v643_v45 = vadd.f32 %v621_v39, %v620_v36  ;;  %v616_v46 = vadd.f32 %v615_v43, %v330_v28  ;;  %v547_v47 = vadd.f32 %v546_v44, %v330_v28  ;;  %v617_v48 = vpop.f32.mrb[3].mxu1 }
  0xf3   : > { %631 = vst [vmem:[%s1064_s10 + $0x18] sm:$0xff] %v623_v41  ;;  %v624_v49 = vmax.f32 %v545_v42, 0.0  ;;  %v618_v50 = vadd.f32 %v617_v48, %v330_v28 }
  0xf4   : > { %v644_v51 = vadd.f32 %v643_v45, %v622_v38  ;;  %v626_v52 = vmax.f32 %v616_v46, 0.0  ;;  %v625_v53 = vmax.f32 %v547_v47, 0.0 }
  0xf5   : > { %632 = vst [vmem:[%s1064_s10 + $0x20] sm:$0xff] %v624_v49  ;;  %v627_v54 = vmax.f32 %v618_v50, 0.0 }
  0xf6   : > { %v645_v55 = vadd.f32 %v644_v51, %v623_v41  ;;  %634 = vst [vmem:[%s1064_s10 + $0x30] sm:$0xff] %v626_v52  ;;  %633 = vst [vmem:[%s1064_s10 + $0x28] sm:$0xff] %v625_v53 }
  0xf7   : > { %635 = vst [vmem:[%s1064_s10 + $0x38] sm:$0xff] %v627_v54 }
  0xf8   : > { %v646_v56 = vadd.f32 %v645_v55, %v624_v49 }
  0xfa   : > { %v647_v57 = vadd.f32 %v646_v56, %v625_v53 }
  0xfc   : > { %v648_v58 = vadd.f32 %v647_v57, %v626_v52 }
  0xfe   : > { %v649_v59 = vadd.f32 %v648_v58, %v627_v54 }
 0x100   : > { %650 = vadd.xlane.f32.xlu0 %v649_v59 }
 0x18d   : > { %v651_v11 = vpop.xlane.xlu0 %650 }
 0x18e   : > { %v656_v13 = vrot.slane %v651_v11, %v655_v3  ;;  %v660_v14 = vrot.slane %v651_v11, %v659_v4  ;;  %v664_v15 = vrot.slane %v651_v11, %v663_v5  ;;  %v668_v16 = vrot.slane %v651_v11, %v667_v6 }
 0x18f   : > { %v672_v17 = vrot.slane %v651_v11, %v671_v7  ;;  %v676_v18 = vrot.slane %v651_v11, %v675_v8  ;;  %v680_v19 = vrot.slane %v651_v11, %v679_v9  ;;  %v684_v20 = vrot.slane %v651_v11, %v683_v10 }
 0x190   : > { %v685_v21 = vcombine.low %v656_v13, %v660_v14  ;;  %v686_v22 = vcombine.low %v664_v15, %v668_v16 }
 0x191   : > { %v687_v23 = vcombine.low %v672_v17, %v676_v18  ;;  %v688_v24 = vcombine.low %v680_v19, %v684_v20 }
 0x192   : > { %v695_v25 = vrot.slane %v685_v21, %v694_v12  ;;  %v702_v26 = vrot.slane %v686_v22, %v694_v12 }
 0x193   : > { %v709_v27 = vrot.slane %v687_v23, %v694_v12  ;;  %v716_v28 = vrot.slane %v688_v24, %v694_v12 }
 0x194   : > { %v717_v29 = vcombine.low %v695_v25, %v702_v26 }
 0x195   : > { %v718_v30 = vcombine.low %v709_v27, %v716_v28 }
 0x196   : > { %v725_v31 = vrot.slane %v717_v29, %v694_v12 }
 0x197   : > { %v732_v32 = vrot.slane %v718_v30, %v694_v12 }
 0x199   : > { %v733_v33 = vcombine.low %v725_v31, %v732_v32 }
 0x19b   : > { %735 = vperm.xlu1 %960, %v733_v33  }
 0x21a   : > { %v736_v34 = vpop.permute.xlu1 %735 }
 0x21b   : > { %v742_v35 = vrot.slane %v736_v34, %v741_v63 }
 0x21d   : > { %v749_v36 = vrot.slane %v742_v35, %v694_v12 }
 0x21f   : > { %v756_v38 = vrot.slane %v749_v36, %v694_v12 }
 0x221   : > { %v758_v39 = vadd.f32 %v756_v38, %v642_v37 }
 0x223   : > { %760 = vst.msk [vmem:[#allocation2] sm:$0x1] %vm640_vm0, %v758_v39 }
 0x22a   : > { %v764_v40 = vld [vmem:[#allocation2] sm:$0x1] }
 0x22b   : > { %765 = vst.msk [vmem:[%s308_s13] sm:$0x1] %vm640_vm0, %v764_v40 }
 0x22c PF: > { %s16_s20 = sadd.s32 1, %s983_s20   ;;  %s1095_s18 = smov %s979_s19 }
 0x22d   : > { %p13_p5 = scmp.ge.s32.totalorder %s16_s20, 4   ;;  %s1096_s19 = smov %s1098_s21 }
 0x22f   :  { %15 = sbr.rel (!%p13_p5) target bundleno = 2 (0x2), region = 89 }

// kernel: jcs_combiner_forward.3
= control target key start
LH: loop header
LB: loop body
LE: loop exit
PB: predicated region body
PF: predicated region fallthrough
CT: control target
= control target key end

     0   :  { %s2758_s26 = smov 0   ;;  %s2760_s2 = smov 0   ;;  %s3921_s0 = inlined_call_operand.vmem [shape: f32[2,8,1024], index: 0, kind: input, shape index: {}, may-alias: {0,1,2}]   ;;  %s3922_s1 = inlined_call_operand.vmem [shape: f32[2,8,1024], index: 1, kind: input, shape index: {}, may-alias: {0,1,2}]   ;;  %s3923_s2 = inlined_call_operand.vmem [shape: f32[2,8,1024], index: 2, kind: input, shape index: {}, may-alias: {0,1,2}]   ;;  %s3924_s3 = inlined_call_operand.vmem [shape: f32[9,1536], index: 3, kind: input, shape index: {}]   ;;  %s3925_s4 = inlined_call_operand.vmem [shape: f32[2,8,1], index: 4, kind: input, shape index: {}]   ;;  %s3926_s5 = inlined_call_operand.vmem [shape: f32[3,8,72], index: 5, kind: input, shape index: {}]   ;;  %s3927_s6 = inlined_call_operand.vmem [shape: f32[8,1], index: 6, kind: input, shape index: {}]   ;;  %s3928_s7 = inlined_call_operand.vmem [shape: f32[8,1], index: 7, kind: input, shape index: {}]   ;;  %s3929_s8 = inlined_call_operand.vmem [shape: f32[2,8,1024], index: 8, kind: output, shape index: {}]  }
   0x1   :  { %s2762_s27 = smov 0  }
   0x2 LB: > { %s30_s28 = sadd.s32 1, %s2697_s2  ;;  %p2392_p0 = scmp.ge.s32.totalorder %s2701_s27, 1  ;;  %s2701_s27 = sphi %s2762_s27, %s18_s27   ;;  %s2697_s2 = sphi %s2760_s2, %s4009_s2   ;;  %s2693_s26 = sphi %s2758_s26, %s4008_s26  }
   0x3   : > { %p32_p1 = scmp.ge.s32.totalorder %s30_s28, 2  ;;  %p358_p2 = scmp.lt.s32.totalorder %s2701_s27, 3 }
   0x5   : > { %s4011_s28 = smov (%p32_p1, %s30_s28), 0  ;;  %p359_p3 = pnand %p2392_p0, %p358_p2 }
   0x7   : > { %362 = sbr.rel (%p359_p3) target bundleno = 717 (0x2cd), region = 52 }
   0xe   : > { %p449_p4 = scmp.lt.s32.totalorder %s2693_s26, 1  ;;  %v2703_v0 = vmov 0   ;;  %s2704_s15 = smov 17   ;;  %v3930_v20 = vmov 0.0   ;;  %v580_v21 = vlaneseq  ;;  %v2951_v28 = vld [vmem:[%s3924_s3 + $0x18] sm:$0xff]  ;;  %v2959_v31 = vld [vmem:[%s3924_s3 + $0x20] sm:$0xff] }
   0xf   : > { %2677 = vset.pattern.permute.xlu0 %v2703_v0  ;;  %2678 = vset.pattern.permute.xlu1 %v2703_v0  ;;  %s2705_s16 = smov 16   ;;  %s2706_s17 = smov 15   ;;  %v2966_v33 = vld [vmem:[%s3924_s3 + $0x28] sm:$0xff]  ;;  %v2990_v43 = vld [vmem:[%s3924_s3 + $0x10] sm:$0xff]  ;;  %vm1337_vm8 = vcmask 588800  }
  0x10   : > { %s4013_s26 = smov (!%p449_p4, %s2693_s26), 1  ;;  %s2707_s18 = smov 1   ;;  %1405 = vmatprep.mubr.f32.mxu0 %v3930_v20  ;;  %1476 = vmatprep.mubr.f32.mxu1 %v3930_v20  ;;  %v2934_v22 = vshrl.u32 %v580_v21, 7  ;;  %v2936_v24 = vand.u32 127, %v580_v21 }
  0x11   : > { %s2399_s29 = sshll.u32 %s4013_s26, 3  ;;  %s2431_s11 = sshll.u32 %s4013_s26, 6 }
  0x12   : > { %s479_s10 = scalar_lea.vmem %s3925_s4, %s2399_s29  ;;  %s2788_s14 = scalar_lea.vmem %s3922_s1, %s2431_s11  ;;  %v2939_v26 = vsub.s32 0, %v2934_v22  ;;  %v2946_v27 = vsub.s32 1, %v2934_v22  ;;  %vm582_vm0 = vcmp.lt.s32.totalorder %v2936_v24, 17  ;;  %vm679_vm1 = vcmp.lt.s32.totalorder %v2936_v24, 16 }
  0x13   : > { %v514_v1 = vld [vmem:[%s479_s10] sm:$0xff]  ;;  %v507_v3 = vld [vmem:[%s2788_s14 + $0x8] sm:$0xff]  ;;  %v508_v7 = vld [vmem:[%s2788_s14 + $0x10] sm:$0xff]  ;;  %s2708_s19 = smov 127   ;;  %s2709_s20 = smov 113   ;;  %vm776_vm2 = vcmp.lt.s32.totalorder %v2936_v24, 15 }
  0x14   : > { %517 = vperm.xlu0 %2677, %v514_v1   ;;  %v506_v2 = vld [vmem:[%s2788_s14] sm:$0xff]  ;;  %v509_v8 = vld [vmem:[%s2788_s14 + $0x18] sm:$0xff]  ;;  %s2710_s21 = smov 112   ;;  %v511_v14 = vld [vmem:[%s2788_s14 + $0x28] sm:$0xff]  ;;  %s2711_s22 = smov 111   ;;  %v610_v32 = vrot.slane %v2951_v28, %v2939_v26  ;;  %v707_v34 = vrot.slane %v2951_v28, %v2946_v27  ;;  %v614_v36 = vrot.slane %v2959_v31, %v2939_v26  ;;  %v618_v39 = vrot.slane %v2966_v33, %v2939_v26 }
  0x15   : > { %v510_v12 = vld [vmem:[%s2788_s14 + $0x20] sm:$0xff]  ;;  %v512_v15 = vld [vmem:[%s2788_s14 + $0x30] sm:$0xff]  ;;  %v513_v18 = vld [vmem:[%s2788_s14 + $0x38] sm:$0xff]  ;;  %v711_v41 = vrot.slane %v2959_v31, %v2946_v27  ;;  %v715_v42 = vrot.slane %v2966_v33, %v2946_v27  ;;  %v606_v51 = vrot.slane %v2990_v43, %v2939_v26  ;;  %v703_v55 = vrot.slane %v2990_v43, %v2946_v27  ;;  %s3902_s25 = scalar_lea.vmem %s3929_s8, %s2431_s11 }
  0x16   : > { %vm873_vm3 = vcmp.lt.s32.totalorder %v2936_v24, 1  ;;  %vm970_vm4 = vcmp.lt.s32.totalorder %v2936_v24, 127  ;;  %vm1067_vm5 = vcmp.lt.s32.totalorder %v2936_v24, 113  ;;  %vm1164_vm6 = vcmp.lt.s32.totalorder %v2936_v24, 112 }
  0x17   : > { %vm1261_vm7 = vcmp.lt.s32.totalorder %v2936_v24, 111 }
  0x93   : > { %v518_v4 = vpop.permute.xlu0 %517 }
  0x94   : > { %v2792_v5 = vmul.f32 %v518_v4, %v506_v2  ;;  %v2794_v6 = vmul.f32 %v518_v4, %v507_v3  ;;  %v2802_v9 = vmul.f32 %v518_v4, %v508_v7  ;;  %v2804_v10 = vmul.f32 %v518_v4, %v509_v8 }
  0x95   : > { %v2818_v11 = vmul.f32 0.0, %v518_v4  ;;  %v2849_v13 = vmul.f32 %v518_v4, %v510_v12  ;;  %v2881_v16 = vmul.f32 %v518_v4, %v511_v14  ;;  %v2883_v17 = vmul.f32 %v518_v4, %v512_v15 }
  0x96   : > { %562 = vrot.lane.b32.xlu1 %v2794_v6, %s2704_s15  ;;  %560 = vrot.lane.b32.xlu0 %v2792_v5, %s2704_s15  ;;  %v2890_v19 = vmul.f32 %v518_v4, %v513_v18  ;;  %v3042_v8 = vsub.s32 2, %v2934_v22  ;;  %v3049_v12 = vsub.s32 3, %v2934_v22 }
  0x98   : > { %v804_v18 = vrot.slane %v2951_v28, %v3042_v8  ;;  %v901_v21 = vrot.slane %v2951_v28, %v3049_v12 }
  0x9a   : > { %564 = vrot.lane.b32.xlu1 %v2802_v9, %s2704_s15  ;;  %566 = vrot.lane.b32.xlu0 %v2804_v10, %s2704_s15 }
  0x9e   : > { %659 = vrot.lane.b32.xlu1 %v2792_v5, %s2705_s16  ;;  %661 = vrot.lane.b32.xlu0 %v2794_v6, %s2705_s16 }
  0xa2   : > { %663 = vrot.lane.b32.xlu1 %v2802_v9, %s2705_s16  ;;  %665 = vrot.lane.b32.xlu0 %v2804_v10, %s2705_s16 }
  0xa6   : > { %558 = vrot.lane.b32.xlu1 %v2818_v11, %s2704_s15  ;;  %657 = vrot.lane.b32.xlu0 %v2818_v11, %s2705_s16 }
  0xaa   : > { %756 = vrot.lane.b32.xlu1 %v2792_v5, %s2706_s17  ;;  %758 = vrot.lane.b32.xlu0 %v2794_v6, %s2706_s17 }
  0xae   : > { %760 = vrot.lane.b32.xlu1 %v2802_v9, %s2706_s17  ;;  %762 = vrot.lane.b32.xlu0 %v2804_v10, %s2706_s17 }
  0xb2   : > { %853 = vrot.lane.b32.xlu1 %v2792_v5, %s2707_s18  ;;  %855 = vrot.lane.b32.xlu0 %v2794_v6, %s2707_s18 }
  0xb6   : > { %857 = vrot.lane.b32.xlu1 %v2802_v9, %s2707_s18  ;;  %859 = vrot.lane.b32.xlu0 %v2804_v10, %s2707_s18 }
  0xba   : > { %754 = vrot.lane.b32.xlu1 %v2818_v11, %s2706_s17  ;;  %851 = vrot.lane.b32.xlu0 %v2818_v11, %s2707_s18 }
  0xbe   : > { %952 = vrot.lane.b32.xlu1 %v2794_v6, %s2708_s19  ;;  %954 = vrot.lane.b32.xlu0 %v2802_v9, %s2708_s19 }
  0xc2   : > { %956 = vrot.lane.b32.xlu1 %v2804_v10, %s2708_s19  ;;  %958 = vrot.lane.b32.xlu0 %v2849_v13, %s2708_s19 }
  0xc6   : > { %950 = vrot.lane.b32.xlu1 %v2792_v5, %s2708_s19  ;;  %1049 = vrot.lane.b32.xlu0 %v2794_v6, %s2709_s20 }
  0xca   : > { %1051 = vrot.lane.b32.xlu1 %v2802_v9, %s2709_s20  ;;  %1053 = vrot.lane.b32.xlu0 %v2804_v10, %s2709_s20 }
  0xce   : > { %1055 = vrot.lane.b32.xlu1 %v2849_v13, %s2709_s20  ;;  %1146 = vrot.lane.b32.xlu0 %v2794_v6, %s2710_s21 }
  0xd2   : > { %1148 = vrot.lane.b32.xlu1 %v2802_v9, %s2710_s21  ;;  %1150 = vrot.lane.b32.xlu0 %v2804_v10, %s2710_s21 }
  0xd6   : > { %1152 = vrot.lane.b32.xlu1 %v2849_v13, %s2710_s21  ;;  %1047 = vrot.lane.b32.xlu0 %v2792_v5, %s2709_s20 }
  0xda   : > { %1144 = vrot.lane.b32.xlu1 %v2792_v5, %s2710_s21  ;;  %568 = vrot.lane.b32.xlu0 %v2849_v13, %s2704_s15 }
  0xde   : > { %570 = vrot.lane.b32.xlu1 %v2881_v16, %s2704_s15  ;;  %572 = vrot.lane.b32.xlu0 %v2883_v17, %s2704_s15 }
  0xe2   : > { %574 = vrot.lane.b32.xlu1 %v2890_v19, %s2704_s15  ;;  %667 = vrot.lane.b32.xlu0 %v2849_v13, %s2705_s16 }
  0xe6   : > { %669 = vrot.lane.b32.xlu1 %v2881_v16, %s2705_s16  ;;  %671 = vrot.lane.b32.xlu0 %v2883_v17, %s2705_s16 }
  0xea   : > { %673 = vrot.lane.b32.xlu1 %v2890_v19, %s2705_s16  ;;  %1243 = vrot.lane.b32.xlu0 %v2794_v6, %s2711_s22 }
  0xee   : > { %1245 = vrot.lane.b32.xlu1 %v2802_v9, %s2711_s22  ;;  %1247 = vrot.lane.b32.xlu0 %v2804_v10, %s2711_s22 }
  0xf2   : > { %1249 = vrot.lane.b32.xlu1 %v2849_v13, %s2711_s22  ;;  %1241 = vrot.lane.b32.xlu0 %v2792_v5, %s2711_s22 }
  0xf6   : > { %764 = vrot.lane.b32.xlu1 %v2849_v13, %s2706_s17  ;;  %766 = vrot.lane.b32.xlu0 %v2881_v16, %s2706_s17 }
  0xfa   : > { %768 = vrot.lane.b32.xlu1 %v2883_v17, %s2706_s17  ;;  %770 = vrot.lane.b32.xlu0 %v2890_v19, %s2706_s17 }
  0xfe   : > { %861 = vrot.lane.b32.xlu1 %v2849_v13, %s2707_s18  ;;  %863 = vrot.lane.b32.xlu0 %v2881_v16, %s2707_s18 }
 0x102   : > { %865 = vrot.lane.b32.xlu1 %v2883_v17, %s2707_s18  ;;  %867 = vrot.lane.b32.xlu0 %v2890_v19, %s2707_s18 }
 0x106   : > { %960 = vrot.lane.b32.xlu1 %v2881_v16, %s2708_s19  ;;  %962 = vrot.lane.b32.xlu0 %v2883_v17, %s2708_s19 }
 0x108   : > { %v563_v23 = vpop.permute.xlu1 %562  ;;  %v561_v25 = vpop.permute.xlu0 %560 }
 0x109   : > { %v591_v35 = vsel %vm582_vm0, %v561_v25, %v563_v23 }
 0x10a   : > { %964 = vrot.lane.b32.xlu1 %v2890_v19, %s2708_s19  ;;  %966 = vrot.lane.b32.xlu0 %v2818_v11, %s2708_s19  ;;  %v646_v44 = vmul.f32 %v610_v32, %v591_v35 }
 0x10c   : > { %v565_v29 = vpop.permute.xlu1 %564  ;;  %v2954_v30 = vpop.permute.xlu0 %566 }
 0x10d   : > { %v590_v45 = vsel %vm582_vm0, %v563_v23, %v565_v29  ;;  %v589_v47 = vsel %vm582_vm0, %v565_v29, %v2954_v30 }
 0x10e   : > { %1057 = vrot.lane.b32.xlu1 %v2881_v16, %s2709_s20  ;;  %1059 = vrot.lane.b32.xlu0 %v2883_v17, %s2709_s20  ;;  %v647_v52 = vmul.f32 %v614_v36, %v590_v45  ;;  %v648_v56 = vmul.f32 %v618_v39, %v589_v47  ;;  %v905_v36 = vrot.slane %v2959_v31, %v3049_v12 }
 0x110   : > { %v660_v37 = vpop.permute.xlu1 %659  ;;  %v662_v38 = vpop.permute.xlu0 %661 }
 0x111   : > { %v688_v40 = vsel %vm679_vm1, %v660_v37, %v662_v38 }
 0x112   : > { %v743_v46 = vmul.f32 %v707_v34, %v688_v40  ;;  %1061 = vrot.lane.b32.xlu1 %v2890_v19, %s2709_s20  ;;  %1063 = vrot.lane.b32.xlu0 %v2818_v11, %s2709_s20  ;;  %v812_v34 = vrot.slane %v2966_v33, %v3042_v8 }
 0x114   : > { %v664_v48 = vpop.permute.xlu1 %663  ;;  %v3001_v49 = vpop.permute.xlu0 %665  ;;  %v3003_v50 = vpack.c.bf16 %v743_v46, %v646_v44  ;;  %v800_v46 = vrot.slane %v2990_v43, %v3042_v8 }
 0x115   : > { %v687_v53 = vsel %vm679_vm1, %v662_v38, %v664_v48  ;;  %v686_v54 = vsel %vm679_vm1, %v664_v48, %v3001_v49 }
 0x116   : > { %v744_v57 = vmul.f32 %v711_v41, %v687_v53  ;;  %v745_v58 = vmul.f32 %v715_v42, %v686_v54  ;;  %1154 = vrot.lane.b32.xlu1 %v2881_v16, %s2710_s21  ;;  %1156 = vrot.lane.b32.xlu0 %v2883_v17, %s2710_s21 }
 0x117   : > { %2436 = vmatprep.subr.bf16.mxu0 %v3003_v50 }
 0x118   : > { %v3019_v59 = vpop.permute.xlu1 %558  ;;  %v3021_v60 = vpop.permute.xlu0 %657  ;;  %v3023_v61 = vpack.c.bf16 %v745_v58, %v648_v56  ;;  %v3025_v62 = vpack.c.bf16 %v744_v57, %v647_v52  ;;  %v897_v52 = vrot.slane %v2990_v43, %v3049_v12  ;;  %v3103_v56 = vsub.s32 5, %v2934_v22 }
 0x119   : > { %v592_v63 = vsel %vm582_vm0, %v3019_v59, %v561_v25  ;;  %v689_v0 = vsel %vm679_vm1, %v3021_v60, %v660_v37  ;;  %v808_v25 = vrot.slane %v2959_v31, %v3042_v8  ;;  %v909_v37 = vrot.slane %v2966_v33, %v3049_v12 }
 0x11a   : > { %3964 = vst [vmem:[#allocation2_spill] sm:$0xff] %v3023_v61  ;;  %3965 = vst [vmem:[#allocation3_spill] sm:$0xff] %v3025_v62  ;;  %v645_v1 = vmul.f32 %v606_v51, %v592_v63  ;;  %v742_v2 = vmul.f32 %v703_v55, %v689_v0  ;;  %1158 = vrot.lane.b32.xlu1 %v2890_v19, %s2710_s21  ;;  %1160 = vrot.lane.b32.xlu0 %v2818_v11, %s2710_s21 }
 0x11b   : > { %2452 = vmatprep.subr.bf16.mxu1 %v3023_v61 }
 0x11c   : > { %2454 = vmatpush1.bf16.msra.mxu1 %v3025_v62  ;;  %v757_v3 = vpop.permute.xlu1 %756  ;;  %v759_v4 = vpop.permute.xlu0 %758  ;;  %v3039_v7 = vpack.c.bf16 %v742_v2, %v645_v1 }
 0x11d   : > { %v785_v23 = vsel %vm776_vm2, %v757_v3, %v759_v4 }
 0x11e   : > { %556 = vrot.lane.b32.xlu1 %v2818_v11, %s2704_s15  ;;  %655 = vrot.lane.b32.xlu0 %v2818_v11, %s2705_s16  ;;  %v840_v38 = vmul.f32 %v804_v18, %v785_v23  ;;  %v998_v18 = vrot.slane %v2951_v28, %v3103_v56 }
 0x11f   : > { %2438 = vmatpush1.bf16.msra.mxu0 %v3039_v7 }
 0x120   : > { %v761_v14 = vpop.permute.xlu1 %760  ;;  %v3053_v15 = vpop.permute.xlu0 %762 }
 0x121   : > { %v784_v39 = vsel %vm776_vm2, %v759_v4, %v761_v14  ;;  %v783_v41 = vsel %vm776_vm2, %v761_v14, %v3053_v15 }
 0x122   : > { %1251 = vrot.lane.b32.xlu1 %v2881_v16, %s2711_s22  ;;  %1253 = vrot.lane.b32.xlu0 %v2883_v17, %s2711_s22  ;;  %v841_v47 = vmul.f32 %v808_v25, %v784_v39  ;;  %v842_v53 = vmul.f32 %v812_v34, %v783_v41  ;;  %v1006_v34 = vrot.slane %v2966_v33, %v3103_v56 }
 0x124   : > { %v854_v29 = vpop.permute.xlu1 %853  ;;  %v856_v32 = vpop.permute.xlu0 %855 }
 0x125   : > { %v882_v35 = vsel %vm873_vm3, %v854_v29, %v856_v32 }
 0x126   : > { %v937_v40 = vmul.f32 %v901_v21, %v882_v35  ;;  %1255 = vrot.lane.b32.xlu1 %v2890_v19, %s2711_s22  ;;  %1257 = vrot.lane.b32.xlu0 %v2818_v11, %s2711_s22 }
 0x128   : > { %v858_v42 = vpop.permute.xlu1 %857  ;;  %v3085_v44 = vpop.permute.xlu0 %859  ;;  %v3087_v45 = vpack.c.bf16 %v937_v40, %v840_v38 }
 0x129   : > { %v881_v48 = vsel %vm873_vm3, %v856_v32, %v858_v42  ;;  %v880_v51 = vsel %vm873_vm3, %v858_v42, %v3085_v44  ;;  %v1002_v32 = vrot.slane %v2959_v31, %v3103_v56  ;;  %v994_v42 = vrot.slane %v2990_v43, %v3103_v56 }
 0x12a   : > { %v938_v54 = vmul.f32 %v905_v36, %v881_v48  ;;  %v939_v55 = vmul.f32 %v909_v37, %v880_v51  ;;  %578 = vrot.lane.b32.xlu1 %v2818_v11, %s2704_s15  ;;  %677 = vrot.lane.b32.xlu0 %v2818_v11, %s2705_s16 }
 0x12b   : > { %2440 = vmatprep.subr.bf16.mxu0 %v3087_v45 }
 0x12c   : > { %v3106_v57 = vpop.permute.xlu1 %754  ;;  %v3108_v58 = vpop.permute.xlu0 %851  ;;  %v3110_v63 = vpack.c.bf16 %v939_v55, %v842_v53  ;;  %v3112_v0 = vpack.c.bf16 %v938_v54, %v841_v47  ;;  %v3180_v54 = vsub.s32 6, %v2934_v22  ;;  %v3187_v55 = vsub.s32 7, %v2934_v22 }
 0x12d   : > { %v786_v1 = vsel %vm776_vm2, %v3106_v57, %v757_v3  ;;  %v883_v2 = vsel %vm873_vm3, %v3108_v58, %v854_v29 }
 0x12e   : > { %3966 = vst [vmem:[#allocation4_spill] sm:$0xff] %v3110_v63  ;;  %3967 = vst [vmem:[#allocation5_spill] sm:$0xff] %v3112_v0  ;;  %v839_v4 = vmul.f32 %v800_v46, %v786_v1  ;;  %v936_v14 = vmul.f32 %v897_v52, %v883_v2  ;;  %752 = vrot.lane.b32.xlu1 %v2818_v11, %s2706_s17  ;;  %849 = vrot.lane.b32.xlu0 %v2818_v11, %s2707_s18 }
 0x12f   : > { %2456 = vmatprep.subr.bf16.mxu1 %v3110_v63  ;;  %v1095_v2 = vrot.slane %v2951_v28, %v3180_v54  ;;  %v1192_v22 = vrot.slane %v2951_v28, %v3187_v55  ;;  %v1200_v28 = vrot.slane %v2966_v33, %v3187_v55  ;;  %v2404_v63 = vld [vmem:[%s3924_s3 + $0x70] ss:$0 sm:$0xff] }
 0x130   : > { %2458 = vmatpush1.bf16.msra.mxu1 %v3112_v0  ;;  %v953_v3 = vpop.permute.xlu1 %952  ;;  %v955_v21 = vpop.permute.xlu0 %954  ;;  %v3129_v23 = vpack.c.bf16 %v936_v14, %v839_v4 }
 0x131   : > { %v978_v25 = vsel %vm970_vm4, %v953_v3, %v955_v21 }
 0x132   : > { %v1034_v29 = vmul.f32 %v998_v18, %v978_v25  ;;  %774 = vrot.lane.b32.xlu1 %v2818_v11, %s2706_s17  ;;  %871 = vrot.lane.b32.xlu0 %v2818_v11, %s2707_s18  ;;  %v1196_v25 = vrot.slane %v2959_v31, %v3187_v55 }
 0x133   : > { %2442 = vmatpush1.bf16.msra.mxu0 %v3129_v23 }
 0x134   : > { %v957_v35 = vpop.permute.xlu1 %956  ;;  %v3142_v36 = vpop.permute.xlu0 %958  ;;  %v3145_v37 = vpack.c.bf16 %v1034_v29, %v2794_v6 }
 0x135   : > { %v977_v38 = vsel %vm970_vm4, %v955_v21, %v957_v35  ;;  %v976_v39 = vsel %vm970_vm4, %v957_v35, %v3142_v36 }
 0x136   : > { %v1035_v40 = vmul.f32 %v1002_v32, %v977_v38  ;;  %v1036_v41 = vmul.f32 %v1006_v34, %v976_v39  ;;  %948 = vrot.lane.b32.xlu1 %v2818_v11, %s2708_s19  ;;  %946 = vrot.lane.b32.xlu0 %v2818_v11, %s2708_s19  ;;  %v1099_v38 = vrot.slane %v2959_v31, %v3180_v54 }
 0x137   : > { %2444 = vmatprep.subr.bf16.mxu0 %v3145_v37 }
 0x138   : > { %v3159_v6 = vpop.permute.xlu1 %950  ;;  %v1050_v46 = vpop.permute.xlu0 %1049  ;;  %v3162_v47 = vpack.c.bf16 %v1036_v41, %v2804_v10  ;;  %v3165_v48 = vpack.c.bf16 %v1035_v40, %v2802_v9 }
 0x139   : > { %v979_v51 = vsel %vm970_vm4, %v3159_v6, %v953_v3  ;;  %v1103_v3 = vrot.slane %v2966_v33, %v3180_v54 }
 0x13a   : > { %3968 = vst [vmem:[#allocation6_spill] sm:$0xff] %v3162_v47  ;;  %3969 = vst [vmem:[#allocation7_spill] sm:$0xff] %v3165_v48  ;;  %v1033_v52 = vmul.f32 %v994_v42, %v979_v51  ;;  %1045 = vrot.lane.b32.xlu1 %v2818_v11, %s2709_s20  ;;  %1142 = vrot.lane.b32.xlu0 %v2818_v11, %s2710_s21  ;;  %v1091_v51 = vrot.slane %v2990_v43, %v3180_v54 }
 0x13b   : > { %2460 = vmatprep.subr.bf16.mxu1 %v3162_v47 }
 0x13c   : > { %2462 = vmatpush1.bf16.msra.mxu1 %v3165_v48  ;;  %v1052_v10 = vpop.permute.xlu1 %1051  ;;  %v1054_v53 = vpop.permute.xlu0 %1053  ;;  %v3177_v9 = vpack.c.bf16 %v1033_v52, %v2792_v5  ;;  %v1188_v52 = vrot.slane %v2990_v43, %v3187_v55 }
 0x13d   : > { %v1075_v4 = vsel %vm1067_vm5, %v1050_v46, %v1052_v10  ;;  %v1074_v42 = vsel %vm1067_vm5, %v1052_v10, %v1054_v53 }
 0x13e   : > { %1043 = vrot.lane.b32.xlu1 %v2818_v11, %s2709_s20  ;;  %1140 = vrot.lane.b32.xlu0 %v2818_v11, %s2710_s21  ;;  %v1131_v29 = vmul.f32 %v1095_v2, %v1075_v4 }
 0x13f   : > { %2446 = vmatpush1.bf16.msra.mxu0 %v3177_v9 }
 0x140   : > { %v3191_v1 = vpop.permute.xlu1 %1055  ;;  %v1147_v5 = vpop.permute.xlu0 %1146 }
 0x141   : > { %v1073_v34 = vsel %vm1067_vm5, %v1054_v53, %v3191_v1  ;;  %v1132_v53 = vmul.f32 %v1099_v38, %v1074_v42  ;;  %v2223_v38 = vld [vmem:[%s3928_s7] sm:$0xff] }
 0x142   : > { %1239 = vrot.lane.b32.xlu1 %v2818_v11, %s2711_s22  ;;  %1237 = vrot.lane.b32.xlu0 %v2818_v11, %s2711_s22  ;;  %v1133_v31 = vmul.f32 %v1103_v3, %v1073_v34 }
 0x144   : > { %v1149_v14 = vpop.permute.xlu1 %1148  ;;  %v1151_v18 = vpop.permute.xlu0 %1150 }
 0x145   : > { %v1172_v21 = vsel %vm1164_vm6, %v1147_v5, %v1149_v14  ;;  %v1171_v35 = vsel %vm1164_vm6, %v1149_v14, %v1151_v18 }
 0x146   : > { %v1228_v32 = vmul.f32 %v1192_v22, %v1172_v21  ;;  %576 = vrot.lane.b32.xlu1 %v2818_v11, %s2704_s15  ;;  %675 = vrot.lane.b32.xlu0 %v2818_v11, %s2705_s16  ;;  %v1229_v2 = vmul.f32 %v1196_v25, %v1171_v35  ;;  %v3262_v25 = vld [vmem:[%s3924_s3 + $0x30] sm:$0xff] }
 0x147   : > { %v719_v34 = vrot.slane %v3262_v25, %v2946_v27 }
 0x148   : > { %v3223_v39 = vpop.permute.xlu1 %1152  ;;  %v3225_v40 = vpop.permute.xlu0 %1047  ;;  %v3227_v41 = vpack.c.bf16 %v1228_v32, %v1131_v29 }
 0x149   : > { %3970 = vst [vmem:[#allocation8_spill] sm:$0xff] %v3225_v40  ;;  %v1170_v33 = vsel %vm1164_vm6, %v1151_v18, %v3223_v39  ;;  %v1076_v10 = vsel %vm1067_vm5, %v3225_v40, %v1050_v46  ;;  %v3257_v46 = vpack.c.bf16 %v1229_v2, %v1132_v53 }
 0x14a   : > { %v1230_v22 = vmul.f32 %v1200_v28, %v1170_v33  ;;  %772 = vrot.lane.b32.xlu1 %v2818_v11, %s2706_s17  ;;  %869 = vrot.lane.b32.xlu0 %v2818_v11, %s2707_s18  ;;  %v1130_v3 = vmul.f32 %v1091_v51, %v1076_v10  ;;  %v622_v28 = vrot.slane %v3262_v25, %v2939_v26 }
 0x14b   : > { %2448 = vmatprep.subr.bf16.mxu0 %v3227_v41  ;;  %3973 = vst [vmem:[#allocation11_spill] sm:$0xff] %v3257_v46 }
 0x14c   : > { %v3246_v4 = vpop.permute.xlu1 %1144  ;;  %v569_v14 = vpop.permute.xlu0 %568  ;;  %v3248_v43 = vpack.c.bf16 %v1230_v22, %v1133_v31 }
 0x14d   : > { %3971 = vst [vmem:[#allocation9_spill] sm:$0xff] %v3246_v4  ;;  %v1173_v18 = vsel %vm1164_vm6, %v3246_v4, %v1147_v5  ;;  %v588_v35 = vsel %vm582_vm0, %v2954_v30, %v569_v14 }
 0x14e   : > { %3972 = vst [vmem:[#allocation10_spill] sm:$0xff] %v3248_v43  ;;  %v1227_v21 = vmul.f32 %v1188_v52, %v1173_v18  ;;  %968 = vrot.lane.b32.xlu1 %v2818_v11, %s2708_s19  ;;  %1065 = vrot.lane.b32.xlu0 %v2818_v11, %s2709_s20  ;;  %v649_v52 = vmul.f32 %v622_v28, %v588_v35  ;;  %v3295_v18 = vld [vmem:[%s3924_s3 + $0x38] sm:$0xff] }
 0x14f   : > { %2464 = vmatprep.subr.bf16.mxu1 %v3248_v43 }
 0x150   : > { %2466 = vmatpush1.bf16.msra.mxu1 %v3257_v46  ;;  %v571_v5 = vpop.permute.xlu1 %570  ;;  %v573_v29 = vpop.permute.xlu0 %572  ;;  %v3266_v32 = vpack.c.bf16 %v1227_v21, %v1130_v3  ;;  %v723_v3 = vrot.slane %v3295_v18, %v2946_v27  ;;  %v2405_v21 = vld [vmem:[%s3924_s3 + $0x78] ss:$0 sm:$0xff] }
 0x151   : > { %v587_v20 = vsel %vm582_vm0, %v569_v14, %v571_v5  ;;  %v2407_v14 = vld [vmem:[%s3924_s3 + $0x88] ss:$0 sm:$0xff]  ;;  %v586_v62 = vsel %vm582_vm0, %v571_v5, %v573_v29 }
 0x152   : > { %1162 = vrot.lane.b32.xlu1 %v2818_v11, %s2710_s21  ;;  %1259 = vrot.lane.b32.xlu0 %v2818_v11, %s2711_s22  ;;  %v3374_v5 = vld [vmem:[%s3926_s5 + $0x8] sm:$0xff] }
 0x153   : > { %2450 = vmatpush1.bf16.msra.mxu0 %v3266_v32 }
 0x154   : > { %v3283_v42 = vpop.permute.xlu1 %574  ;;  %v668_v33 = vpop.permute.xlu0 %667 }
 0x155   : > { %3974 = vst [vmem:[#allocation12_spill] sm:$0xff] %v3283_v42  ;;  %v685_v51 = vsel %vm679_vm1, %v3001_v49, %v668_v33  ;;  %v3301_v49 = vld [vmem:[%s3924_s3 + $0x48] sm:$0xff]  ;;  %v585_v47 = vsel %vm582_vm0, %v573_v29, %v3283_v42  ;;  %v2406_v42 = vld [vmem:[%s3924_s3 + $0x80] ss:$0 sm:$0xff] }
 0x156   : > { %v746_v31 = vmul.f32 %v719_v34, %v685_v51  ;;  %2226 = vperm.xlu0 %2677, %v2223_v38   ;;  %v731_v34 = vrot.slane %v3301_v49, %v2946_v27  ;;  %v626_v51 = vrot.slane %v3295_v18, %v2939_v26  ;;  %v634_v46 = vrot.slane %v3301_v49, %v2939_v26 }
 0x158   : > { %v3288_v2 = vpack.c.bf16 %v746_v31, %v649_v52  ;;  %v670_v22 = vpop.permute.xlu1 %669  ;;  %v672_v30 = vpop.permute.xlu0 %671  ;;  %v3317_v52 = vld [vmem:[%s3924_s3 + $0x40] sm:$0xff]  ;;  %v652_v61 = vmul.f32 %v634_v46, %v585_v47  ;;  %v816_v46 = vrot.slane %v3262_v25, %v3042_v8 }
 0x159   : > { %v684_v28 = vsel %vm679_vm1, %v668_v33, %v670_v22  ;;  %v727_v43 = vrot.slane %v3317_v52, %v2946_v27 }
 0x15a   : > { %3975 = vst [vmem:[#allocation13_spill] sm:$0xff] %v3288_v2  ;;  %v747_v0 = vmul.f32 %v723_v3, %v684_v28  ;;  %v650_v28 = vmul.f32 %v626_v51, %v587_v20 }
 0x15c   : > { %v3290_v10 = vpop.permute.xlu1 %673  ;;  %v1244_v53 = vpop.permute.xlu0 %1243  ;;  %v3369_v20 = vpack.c.bf16 %v747_v0, %v650_v28  ;;  %v3983_v0 = vmov 0.0  }
 0x15d   : > { %3976 = vst [vmem:[#allocation14_spill] sm:$0xff] %v3290_v10  ;;  %v682_v31 = vsel %vm679_vm1, %v672_v30, %v3290_v10  ;;  %v683_v10 = vsel %vm679_vm1, %v670_v22, %v672_v30 }
 0x160   : > { %v1246_v35 = vpop.permute.xlu1 %1245  ;;  %v1248_v38 = vpop.permute.xlu0 %1247 }
 0x161   : > { %v1269_v33 = vsel %vm1261_vm7, %v1244_v53, %v1246_v35  ;;  %v1268_v3 = vsel %vm1261_vm7, %v1246_v35, %v1248_v38  ;;  %v748_v35 = vmul.f32 %v727_v43, %v683_v10  ;;  %v913_v10 = vrot.slane %v3262_v25, %v3049_v12 }
 0x162   : > { %v3330_v48 = vmul.f32 %v2405_v21, %v1269_v33  ;;  %v630_v21 = vrot.slane %v3317_v52, %v2939_v26  ;;  %v749_v33 = vmul.f32 %v731_v34, %v682_v31 }
 0x164   : > { %3977 = vst [vmem:[#allocation15_spill] sm:$0xff] %v3330_v48  ;;  %v3350_v22 = vpop.permute.xlu1 %1249  ;;  %1357 = vmatprep.subr.mxu0 %v3330_v48  ;;  %v3353_v30 = vpop.permute.xlu0 %1241  ;;  %v3367_v48 = vmul.f32 %v2406_v42, %v1268_v3  ;;  %v651_v29 = vmul.f32 %v630_v21, %v586_v62  ;;  %v3378_v43 = vpack.c.bf16 %v749_v33, %v652_v61 }
 0x165   : > { %3978 = vst [vmem:[#allocation16_spill] sm:$0xff] %v3353_v30  ;;  %v1267_v34 = vsel %vm1261_vm7, %v1248_v38, %v3350_v22  ;;  %v1270_v31 = vsel %vm1261_vm7, %v3353_v30, %v1244_v53  ;;  %v820_v42 = vrot.slane %v3295_v18, %v3042_v8  ;;  %v917_v53 = vrot.slane %v3295_v18, %v3049_v12 }
 0x166   : > { %v3363_v4 = vmul.f32 %v2407_v14, %v1267_v34  ;;  %v3365_v40 = vmul.f32 %v2404_v63, %v1270_v31  ;;  %3980 = vst [vmem:[#allocation18_spill] sm:$0xff] %v3367_v48  ;;  %3981 = vst [vmem:[#allocation19_spill] sm:$0xff] %v3378_v43  ;;  %v3382_v63 = vpack.c.bf16 %v748_v35, %v651_v29 }
 0x167   : > { %v824_v21 = vrot.slane %v3317_v52, %v3042_v8  ;;  %v828_v33 = vrot.slane %v3301_v49, %v3042_v8  ;;  %v925_v35 = vrot.slane %v3301_v49, %v3049_v12 }
 0x168   : > { %3979 = vst [vmem:[#allocation17_spill] sm:$0xff] %v3363_v4  ;;  %v765_v38 = vpop.permute.xlu1 %764  ;;  %1358 = vmatpush1.msra.mxu0 %v3365_v40  ;;  %1428 = vmatprep.subr.mxu1 %v3363_v4  ;;  %v767_v47 = vpop.permute.xlu0 %766  ;;  %3982 = vst [vmem:[#allocation20_spill] sm:$0xff] %v3382_v63 }
 0x169   : > { %1429 = vmatpush1.msra.mxu1 %v3367_v48  ;;  %2468 = vmatprep.subr.bf16.mxu0 %v3369_v20  ;;  %v782_v51 = vsel %vm776_vm2, %v3053_v15, %v765_v38  ;;  %v781_v14 = vsel %vm776_vm2, %v765_v38, %v767_v47  ;;  %v921_v15 = vrot.slane %v3317_v52, %v3049_v12 }
 0x16a   : > { %2415 = vmatmul.mubr.msk.f32.vlgmr.msra.gmra.mrb[0].mxu0 %vm1337_vm8, %v3374_v5  ;;  %2484 = vmatprep.subr.bf16.mxu1 %v3378_v43  ;;  %v843_v29 = vmul.f32 %v816_v46, %v782_v51  ;;  %v844_v38 = vmul.f32 %v820_v42, %v781_v14 }
 0x16b   : > { %2470 = vmatpush1.bf16.msra.mxu0 %v3288_v2  ;;  %2416 = vmatmul.mubr.msk.f32.vlgmr.msra.gmra.mrb[0].mxu1 %vm1337_vm8, %v3374_v5 }
 0x16c   : > { %2486 = vmatpush1.bf16.msra.mxu1 %v3382_v63  ;;  %v769_v61 = vpop.permute.xlu1 %768  ;;  %v3391_v62 = vpop.permute.xlu0 %770  ;;  %1618 = vmatprep.mubr.f32.mxu1 %v3983_v0 }
 0x16d   : > { %1547 = vmatprep.mubr.f32.mxu0 %v3983_v0  ;;  %v780_v48 = vsel %vm776_vm2, %v767_v47, %v769_v61 }
 0x170   : > { %v862_v3 = vpop.permute.xlu1 %861  ;;  %v864_v28 = vpop.permute.xlu0 %863 }
 0x171   : > { %v879_v34 = vsel %vm873_vm3, %v3085_v44, %v862_v3  ;;  %v878_v31 = vsel %vm873_vm3, %v862_v3, %v864_v28  ;;  %v779_v44 = vsel %vm776_vm2, %v769_v61, %v3391_v62  ;;  %v2209_v3 = vld [vmem:[%s3927_s6] sm:$0xff]  ;;  %v1010_v61 = vrot.slane %v3262_v25, %v3103_v56 }
 0x172   : > { %v940_v63 = vmul.f32 %v913_v10, %v879_v34  ;;  %v941_v43 = vmul.f32 %v917_v53, %v878_v31  ;;  %2212 = vperm.xlu1 %2678, %v2209_v3   ;;  %v845_v10 = vmul.f32 %v824_v21, %v780_v48  ;;  %v846_v53 = vmul.f32 %v828_v33, %v779_v44 }
 0x174   : > { %v3429_v4 = vpack.c.bf16 %v940_v63, %v843_v29  ;;  %v866_v30 = vpop.permute.xlu1 %865  ;;  %v3431_v2 = vpop.permute.xlu0 %867  ;;  %v3433_v46 = vpack.c.bf16 %v941_v43, %v844_v38  ;;  %v1014_v63 = vrot.slane %v3295_v18, %v3103_v56 }
 0x175   : > { %v877_v42 = vsel %vm873_vm3, %v864_v28, %v866_v30  ;;  %v876_v47 = vsel %vm873_vm3, %v866_v30, %v3431_v2 }
 0x176   : > { %v942_v51 = vmul.f32 %v921_v15, %v877_v42  ;;  %v943_v14 = vmul.f32 %v925_v35, %v876_v47  ;;  %2472 = vmatprep.subr.bf16.mxu0 %v3433_v46  ;;  %v1018_v15 = vrot.slane %v3317_v52, %v3103_v56  ;;  %v1022_v35 = vrot.slane %v3301_v49, %v3103_v56 }
 0x177   : > { %2474 = vmatpush1.bf16.msra.mxu0 %v3429_v4 }
 0x178   : > { %v3446_v43 = vpack.c.bf16 %v942_v51, %v845_v10  ;;  %v961_v28 = vpop.permute.xlu1 %960  ;;  %v963_v34 = vpop.permute.xlu0 %962  ;;  %v3448_v31 = vpack.c.bf16 %v943_v14, %v846_v53  ;;  %v1107_v14 = vrot.slane %v3262_v25, %v3180_v54 }
 0x179   : > { %v975_v30 = vsel %vm970_vm4, %v3142_v36, %v961_v28  ;;  %v974_v48 = vsel %vm970_vm4, %v961_v28, %v963_v34  ;;  %v1111_v28 = vrot.slane %v3295_v18, %v3180_v54 }
 0x17a   : > { %v1037_v21 = vmul.f32 %v1010_v61, %v975_v30  ;;  %v1038_v33 = vmul.f32 %v1014_v63, %v974_v48  ;;  %2488 = vmatprep.subr.bf16.mxu1 %v3448_v31  ;;  %v1115_v48 = vrot.slane %v3317_v52, %v3180_v54 }
 0x17b   : > { %2490 = vmatpush1.bf16.msra.mxu1 %v3446_v43 }
 0x17c   : > { %v3462_v29 = vpack.c.bf16 %v1037_v21, %v2849_v13  ;;  %v965_v38 = vpop.permute.xlu1 %964  ;;  %v3464_v36 = vpop.permute.xlu0 %966  ;;  %v3467_v44 = vpack.c.bf16 %v1038_v33, %v2881_v16  ;;  %v1119_v21 = vrot.slane %v3301_v49, %v3180_v54 }
 0x17d   : > { %v973_v3 = vsel %vm970_vm4, %v963_v34, %v965_v38  ;;  %v972_v42 = vsel %vm970_vm4, %v965_v38, %v3464_v36 }
 0x17e   : > { %v1039_v47 = vmul.f32 %v1018_v15, %v973_v3  ;;  %v1040_v61 = vmul.f32 %v1022_v35, %v972_v42  ;;  %2476 = vmatprep.subr.bf16.mxu0 %v3467_v44  ;;  %v1216_v35 = vrot.slane %v3301_v49, %v3187_v55 }
 0x17f   : > { %2478 = vmatpush1.bf16.msra.mxu0 %v3462_v29 }
 0x180   : > { %v3477_v13 = vpack.c.bf16 %v1039_v47, %v2883_v17  ;;  %v1058_v63 = vpop.permute.xlu1 %1057  ;;  %v1060_v10 = vpop.permute.xlu0 %1059  ;;  %v3480_v16 = vpack.c.bf16 %v1040_v61, %v2890_v19  ;;  %v1204_v17 = vrot.slane %v3262_v25, %v3187_v55  ;;  %v1208_v19 = vrot.slane %v3295_v18, %v3187_v55 }
 0x181   : > { %v1072_v34 = vsel %vm1067_vm5, %v3191_v1, %v1058_v63  ;;  %v1071_v30 = vsel %vm1067_vm5, %v1058_v63, %v1060_v10  ;;  %v1212_v1 = vrot.slane %v3317_v52, %v3187_v55 }
 0x182   : > { %3984 = vst [vmem:[#allocation21_spill] sm:$0xff] %v3477_v13  ;;  %2492 = vmatprep.subr.bf16.mxu1 %v3480_v16  ;;  %v1134_v38 = vmul.f32 %v1107_v14, %v1072_v34  ;;  %v1135_v3 = vmul.f32 %v1111_v28, %v1071_v30 }
 0x183   : > { %2494 = vmatpush1.bf16.msra.mxu1 %v3477_v13 }
 0x184   : > { %v1062_v53 = vpop.permute.xlu1 %1061  ;;  %v3484_v51 = vpop.permute.xlu0 %1063 }
 0x185   : > { %v1070_v61 = vsel %vm1067_vm5, %v1060_v10, %v1062_v53  ;;  %v3531_v10 = vld [vmem:[%s3924_s3 + $0x8] sm:$0xff] }
 0x186   : > { %v602_v30 = vrot.slane %v3531_v10, %v2939_v26 }
 0x188   : > { %v1155_v33 = vpop.permute.xlu1 %1154  ;;  %v1157_v15 = vpop.permute.xlu0 %1156 }
 0x189   : > { %v1169_v25 = vsel %vm1164_vm6, %v3223_v39, %v1155_v33  ;;  %v1168_v18 = vsel %vm1164_vm6, %v1155_v33, %v1157_v15  ;;  %v1069_v39 = vsel %vm1067_vm5, %v1062_v53, %v3484_v51  ;;  %v1136_v53 = vmul.f32 %v1115_v48, %v1070_v61  ;;  %v4006_v24 = vld [vmem:[#allocation21_spill] sm:$0xff] }
 0x18a   : > { %v1231_v42 = vmul.f32 %v1204_v17, %v1169_v25  ;;  %v1232_v47 = vmul.f32 %v1208_v19, %v1168_v18  ;;  %v1137_v28 = vmul.f32 %v1119_v21, %v1069_v39  ;;  %v699_v25 = vrot.slane %v3531_v10, %v2946_v27 }
 0x18c   : > { %v3517_v63 = vpack.c.bf16 %v1231_v42, %v1134_v38  ;;  %v1159_v33 = vpop.permute.xlu1 %1158  ;;  %v3519_v13 = vpop.permute.xlu0 %1160  ;;  %v3521_v52 = vpack.c.bf16 %v1232_v47, %v1135_v3 }
 0x18d   : > { %v1167_v49 = vsel %vm1164_vm6, %v1157_v15, %v1159_v33  ;;  %v1166_v14 = vsel %vm1164_vm6, %v1159_v33, %v3519_v13 }
 0x18e   : > { %v1233_v17 = vmul.f32 %v1212_v1, %v1167_v49  ;;  %v1234_v19 = vmul.f32 %v1216_v35, %v1166_v14  ;;  %2480 = vmatprep.subr.bf16.mxu0 %v3521_v52  ;;  %v2408_v1 = vld [vmem:[%s3924_s3 + $0x90] ss:$0 sm:$0xff]  ;;  %v2409_v35 = vld [vmem:[%s3924_s3 + $0x98] ss:$0 sm:$0xff]  ;;  %v3569_v49 = vld [vmem:[%s3924_s3] sm:$0xff] }
 0x18f   : > { %2482 = vmatpush1.bf16.msra.mxu0 %v3517_v63  ;;  %v2410_v14 = vld [vmem:[%s3924_s3 + $0xa0] ss:$0 sm:$0xff] }
 0x190   : > { %v3535_v34 = vpack.c.bf16 %v1233_v17, %v1136_v53  ;;  %v557_v15 = vpop.permute.xlu1 %556  ;;  %v656_v18 = vpop.permute.xlu0 %655  ;;  %v3541_v38 = vpack.c.bf16 %v1234_v19, %v1137_v28 }
 0x191   : > { %v593_v48 = vsel %vm582_vm0, %v557_v15, %v3019_v59  ;;  %v690_v21 = vsel %vm679_vm1, %v656_v18, %v3021_v60 }
 0x192   : > { %2496 = vmatprep.subr.bf16.mxu1 %v3541_v38  ;;  %v644_v3 = vmul.f32 %v602_v30, %v593_v48  ;;  %v741_v42 = vmul.f32 %v699_v25, %v690_v21  ;;  %v598_v25 = vrot.slane %v3569_v49, %v2939_v26 }
 0x193   : > { %2498 = vmatpush1.bf16.msra.mxu1 %v3535_v34 }
 0x194   : > { %v1252_v47 = vpop.permute.xlu1 %1251  ;;  %v1254_v59 = vpop.permute.xlu0 %1253  ;;  %v2499_v17 = vpack.c.bf16 %v741_v42, %v644_v3 }
 0x195   : > { %v1266_v60 = vsel %vm1261_vm7, %v3350_v22, %v1252_v47  ;;  %v1265_v61 = vsel %vm1261_vm7, %v1252_v47, %v1254_v59  ;;  %v2411_v22 = vld [vmem:[%s3924_s3 + $0xa8] ss:$0 sm:$0xff] }
 0x196   : > { %v3562_v39 = vmul.f32 %v2408_v1, %v1266_v60  ;;  %v3564_v33 = vmul.f32 %v2409_v35, %v1265_v61  ;;  %v695_v1 = vrot.slane %v3569_v49, %v2946_v27 }
 0x198   : > { %v1256_v53 = vpop.permute.xlu1 %1255  ;;  %1499 = vmatprep.subr.mxu0 %v3564_v33  ;;  %v3578_v28 = vpop.permute.xlu0 %1257 }
 0x199   : > { %v1264_v19 = vsel %vm1261_vm7, %v1254_v59, %v1256_v53  ;;  %v1263_v30 = vsel %vm1261_vm7, %v1256_v53, %v3578_v28  ;;  %1500 = vmatpush1.msra.mxu0 %v3562_v39  ;;  %v796_v59 = vrot.slane %v3531_v10, %v3042_v8 }
 0x19a   : > { %v3588_v48 = vmul.f32 %v2410_v14, %v1264_v19  ;;  %v3590_v21 = vmul.f32 %v2411_v22, %v1263_v30  ;;  %2500 = vmatprep.subr.bf16.mxu0 %v2499_v17  ;;  %2417 = vmatmul.mubr.msk.f32.vlgmr.msra.gmra.mrb[2].mxu0 %vm1337_vm8, %v3374_v5  ;;  %v893_v14 = vrot.slane %v3531_v10, %v3049_v12 }
 0x19b   : > { %1692 = vmatprep.mubr.f32.mxu0 %v3983_v0  ;;  %v889_v19 = vrot.slane %v3569_v49, %v3049_v12 }
 0x19c   : > { %3985 = vst [vmem:[#allocation22_spill] sm:$0xff] %v3588_v48  ;;  %v3597_v35 = vpop.permute.xlu1 %578  ;;  %1570 = vmatprep.subr.mxu1 %v3590_v21  ;;  %v3600_v3 = vpop.permute.xlu0 %677 }
 0x19d   : > { %v594_v42 = vsel %vm582_vm0, %v3597_v35, %v557_v15  ;;  %v691_v47 = vsel %vm679_vm1, %v3600_v3, %v656_v18  ;;  %1571 = vmatpush1.msra.mxu1 %v3588_v48 }
 0x19e   : > { %v643_v60 = vmul.f32 %v598_v25, %v594_v42  ;;  %v740_v61 = vmul.f32 %v695_v1, %v691_v47  ;;  %2516 = vmatprep.subr.bf16.mxu1 %v3003_v50  ;;  %2418 = vmatmul.mubr.msk.f32.vlgmr.msra.gmra.mrb[2].mxu1 %vm1337_vm8, %v3374_v5 }
 0x19f   : > { %2518 = vmatpush1.bf16.msra.mxu1 %v3039_v7  ;;  %1763 = vmatprep.mubr.f32.mxu1 %v3983_v0  ;;  %v792_v7 = vrot.slane %v3569_v49, %v3042_v8 }
 0x1a0   : > { %v2501_v15 = vpack.c.bf16 %v740_v61, %v643_v60  ;;  %v753_v18 = vpop.permute.xlu1 %752  ;;  %2520 = vmatprep.subr.bf16.mxu1 %v3087_v45  ;;  %v850_v22 = vpop.permute.xlu0 %849 }
 0x1a1   : > { %v787_v53 = vsel %vm776_vm2, %v753_v18, %v3106_v57  ;;  %v884_v50 = vsel %vm873_vm3, %v850_v22, %v3108_v58 }
 0x1a2   : > { %v838_v5 = vmul.f32 %v796_v59, %v787_v53  ;;  %v935_v17 = vmul.f32 %v893_v14, %v884_v50  ;;  %2502 = vmatpush1.bf16.msra.mxu0 %v2501_v15  ;;  %v3986_v50 = vld [vmem:[#allocation15_spill] sm:$0xff] }
 0x1a3   : > { %2522 = vmatpush1.bf16.msra.mxu1 %v3129_v23  ;;  %v990_v23 = vrot.slane %v3531_v10, %v3103_v56 }
 0x1a4   : > { %v3630_v45 = vpop.permute.xlu1 %774  ;;  %2524 = vmatprep.subr.bf16.mxu1 %v3145_v37  ;;  %v3633_v57 = vpop.permute.xlu0 %871  ;;  %v2503_v30 = vpack.c.bf16 %v935_v17, %v838_v5  ;;  %v986_v37 = vrot.slane %v3569_v49, %v3103_v56  ;;  %v3987_v17 = vld [vmem:[#allocation8_spill] sm:$0xff] }
 0x1a5   : > { %v788_v58 = vsel %vm776_vm2, %v3630_v45, %v753_v18  ;;  %v885_v25 = vsel %vm873_vm3, %v3633_v57, %v850_v22  ;;  %v1184_v22 = vrot.slane %v3531_v10, %v3187_v55 }
 0x1a6   : > { %v837_v1 = vmul.f32 %v792_v7, %v788_v58  ;;  %v934_v42 = vmul.f32 %v889_v19, %v885_v25  ;;  %2504 = vmatprep.subr.bf16.mxu0 %v2503_v30  ;;  %v3988_v19 = vld [vmem:[#allocation9_spill] sm:$0xff]  ;;  %v1083_v25 = vrot.slane %v3569_v49, %v3180_v54 }
 0x1a7   : > { %2526 = vmatpush1.bf16.msra.mxu1 %v3177_v9  ;;  %v1087_v9 = vrot.slane %v3531_v10, %v3180_v54 }
 0x1a8   : > { %v2505_v47 = vpack.c.bf16 %v934_v42, %v837_v1  ;;  %v949_v59 = vpop.permute.xlu1 %948  ;;  %2528 = vmatprep.subr.bf16.mxu1 %v3227_v41  ;;  %v3647_v60 = vpop.permute.xlu0 %946  ;;  %v1180_v1 = vrot.slane %v3569_v49, %v3187_v55 }
 0x1a9   : > { %v980_v61 = vsel %vm970_vm4, %v949_v59, %v3159_v6  ;;  %v981_v14 = vsel %vm970_vm4, %v3647_v60, %v949_v59  ;;  %v3989_v59 = vld [vmem:[#allocation13_spill] sm:$0xff] }
 0x1aa   : > { %v1032_v15 = vmul.f32 %v990_v23, %v980_v61  ;;  %v1031_v18 = vmul.f32 %v986_v37, %v981_v14  ;;  %2506 = vmatpush1.bf16.msra.mxu0 %v2505_v47  ;;  %v2403_v14 = vld [vmem:[%s3924_s3 + $0x68] ss:$0 sm:$0xff] }
 0x1ab   : > { %2530 = vmatpush1.bf16.msra.mxu1 %v3266_v32  ;;  %v3672_v32 = vld [vmem:[%s3926_s5] sm:$0xff] }
 0x1ac   : > { %v2509_v41 = vpack.c.bf16 %v1031_v18, %v2818_v11  ;;  %v1046_v53 = vpop.permute.xlu1 %1045  ;;  %1715 = vmatprep.subr.mxu1 %v3986_v50  ;;  %v1143_v6 = vpop.permute.xlu0 %1142  ;;  %v2507_v5 = vpack.c.bf16 %v1032_v15, %v2818_v11 }
 0x1ad   : > { %v1077_v7 = vsel %vm1067_vm5, %v1046_v53, %v3987_v17  ;;  %v1174_v30 = vsel %vm1164_vm6, %v1143_v6, %v3988_v19  ;;  %v3991_v19 = vld [vmem:[#allocation2_spill] sm:$0xff] }
 0x1ae   : > { %v1129_v10 = vmul.f32 %v1087_v9, %v1077_v7  ;;  %v1226_v58 = vmul.f32 %v1184_v22, %v1174_v30  ;;  %2508 = vmatprep.subr.bf16.mxu0 %v2507_v5  ;;  %v3990_v22 = vld [vmem:[#allocation16_spill] sm:$0xff] }
 0x1af   : > { %2510 = vmatpush1.bf16.msra.mxu0 %v2509_v41  ;;  %1716 = vmatpush1.msra.mxu1 %v3365_v40 }
 0x1b0   : > { %v3679_v42 = vpop.permute.xlu1 %1043  ;;  %2548 = vmatprep.subr.bf16.mxu1 %v3369_v20  ;;  %v3682_v23 = vpop.permute.xlu0 %1140  ;;  %2420 = vmatmul.mubr.msk.f32.vlgmr.msra.gmra.mrb[0].mxu1 %vm1337_vm8, %v3672_v32  ;;  %v2511_v37 = vpack.c.bf16 %v1226_v58, %v1129_v10  ;;  %v3992_v58 = vld [vmem:[#allocation3_spill] sm:$0xff] }
 0x1b1   : > { %v1078_v47 = vsel %vm1067_vm5, %v3679_v42, %v1046_v53  ;;  %v1175_v49 = vsel %vm1164_vm6, %v3682_v23, %v1143_v6  ;;  %2550 = vmatpush1.bf16.msra.mxu1 %v3989_v59  ;;  %1905 = vmatprep.mubr.f32.mxu1 %v3983_v0  ;;  %v2402_v53 = vld [vmem:[%s3924_s3 + $0x60] ss:$0 sm:$0xff] }
 0x1b2   : > { %v1128_v40 = vmul.f32 %v1083_v25, %v1078_v47  ;;  %v1225_v61 = vmul.f32 %v1180_v1, %v1175_v49  ;;  %2512 = vmatprep.subr.bf16.mxu0 %v2511_v37  ;;  %2552 = vmatprep.subr.bf16.mxu1 %v3433_v46  ;;  %v3993_v25 = vld [vmem:[#allocation4_spill] sm:$0xff]  ;;  %v3994_v49 = vld [vmem:[#allocation5_spill] sm:$0xff] }
 0x1b3   : > { %v3732_v47 = vld [vmem:[%s3924_s3 + $0x50] sm:$0xff] }
 0x1b4   : > { %v2513_v15 = vpack.c.bf16 %v1225_v61, %v1128_v40  ;;  %v1240_v18 = vpop.permute.xlu1 %1239  ;;  %v3698_v9 = vpop.permute.xlu0 %1237  ;;  %v1123_v40 = vrot.slane %v3732_v47, %v3180_v54  ;;  %v3995_v61 = vld [vmem:[#allocation6_spill] sm:$0xff] }
 0x1b5   : > { %v1271_v41 = vsel %vm1261_vm7, %v1240_v18, %v3990_v22  ;;  %v1272_v50 = vsel %vm1261_vm7, %v3698_v9, %v1240_v18  ;;  %2554 = vmatpush1.bf16.msra.mxu1 %v3429_v4 }
 0x1b6   : > { %v1323_v6 = vmul.f32 %v2403_v14, %v1271_v41  ;;  %2514 = vmatpush1.bf16.msra.mxu0 %v2513_v15  ;;  %2556 = vmatprep.subr.bf16.mxu1 %v3467_v44  ;;  %v1322_v5 = vmul.f32 %v2402_v53, %v1272_v50  ;;  %v1220_v14 = vrot.slane %v3732_v47, %v3187_v55  ;;  %v3996_v41 = vld [vmem:[#allocation7_spill] sm:$0xff]  ;;  %v3768_v50 = vld [vmem:[%s3924_s3 + $0x58] sm:$0xff] }
 0x1b8   : > { %v577_v17 = vpop.permute.xlu1 %576  ;;  %1644 = vmatprep.subr.mxu0 %v1323_v6  ;;  %v676_v7 = vpop.permute.xlu0 %675  ;;  %v3999_v6 = vld [vmem:[#allocation17_spill] sm:$0xff] }
 0x1b9   : > { %2558 = vmatpush1.bf16.msra.mxu1 %v3462_v29 }
 0x1ba   : > { %1645 = vmatpush1.msra.mxu0 %v1322_v5  ;;  %2560 = vmatprep.subr.bf16.mxu1 %v3521_v52  ;;  %v642_v5 = vrot.slane %v3768_v50, %v2939_v26 }
 0x1bb   : > { %2532 = vmatprep.subr.bf16.mxu0 %v3991_v19  ;;  %2419 = vmatmul.mubr.msk.f32.vlgmr.msra.gmra.mrb[0].mxu0 %vm1337_vm8, %v3672_v32 }
 0x1bc   : > { %v3714_v30 = vpop.permute.xlu1 %772  ;;  %v3718_v10 = vpop.permute.xlu0 %869  ;;  %2534 = vmatpush1.bf16.msra.mxu0 %v3992_v58  ;;  %1834 = vmatprep.mubr.f32.mxu0 %v3983_v0 }
 0x1bd   : > { %2536 = vmatprep.subr.bf16.mxu0 %v3993_v25  ;;  %2562 = vmatpush1.bf16.msra.mxu1 %v3517_v63 }
 0x1be   : > { %1857 = vmatprep.subr.mxu1 %v3564_v33 }
 0x1c0   : > { %v3725_v1 = vpop.permute.xlu1 %968  ;;  %v3727_v37 = vpop.permute.xlu0 %1065  ;;  %2538 = vmatpush1.bf16.msra.mxu0 %v3994_v49 }
 0x1c1   : > { %2540 = vmatprep.subr.bf16.mxu0 %v3995_v61  ;;  %v1068_v15 = vsel %vm1067_vm5, %v3484_v51, %v3727_v37  ;;  %1858 = vmatpush1.msra.mxu1 %v3562_v39 }
 0x1c2   : > { %2580 = vmatprep.subr.bf16.mxu1 %v3369_v20  ;;  %2422 = vmatmul.mubr.msk.f32.vlgmr.msra.gmra.mrb[2].mxu1 %vm1337_vm8, %v3672_v32  ;;  %v3756_v53 = vmul.f32 %v1123_v40, %v1068_v15  ;;  %v3997_v20 = vld [vmem:[#allocation10_spill] sm:$0xff]  ;;  %v735_v40 = vrot.slane %v3732_v47, %v2946_v27  ;;  %v836_v15 = vrot.slane %v3768_v50, %v3042_v8 }
 0x1c3   : > { %2582 = vmatpush1.bf16.msra.mxu1 %v3989_v59  ;;  %2052 = vmatprep.mubr.f32.mxu1 %v3983_v0 }
 0x1c4   : > { %v3748_v18 = vpop.permute.xlu1 %1162  ;;  %2542 = vmatpush1.bf16.msra.mxu0 %v3996_v41  ;;  %2584 = vmatprep.subr.bf16.mxu1 %v3433_v46  ;;  %v638_v46 = vrot.slane %v3732_v47, %v2939_v26  ;;  %v4000_v26 = vld [vmem:[#allocation18_spill] sm:$0xff] }
 0x1c5   : > { %v1165_v22 = vsel %vm1164_vm6, %v3519_v13, %v3748_v18  ;;  %2544 = vmatprep.subr.bf16.mxu0 %v3997_v20  ;;  %v3998_v13 = vld [vmem:[#allocation11_spill] sm:$0xff] }
 0x1c6   : > { %v3758_v51 = vmul.f32 %v1220_v14, %v1165_v22  ;;  %v739_v14 = vrot.slane %v3768_v50, %v2946_v27  ;;  %v4001_v22 = vld [vmem:[#allocation12_spill] sm:$0xff]  ;;  %v4002_v27 = vld [vmem:[#allocation14_spill] sm:$0xff] }
 0x1c7   : > { %2586 = vmatpush1.bf16.msra.mxu1 %v3429_v4  ;;  %v583_v4 = vsel %vm582_vm0, %v577_v17, %v3597_v35  ;;  %v584_v59 = vsel %vm582_vm0, %v4001_v22, %v577_v17  ;;  %v681_v48 = vsel %vm679_vm1, %v4002_v27, %v676_v7  ;;  %v933_v35 = vrot.slane %v3768_v50, %v3049_v12 }
 0x1c8   : > { %2546 = vmatpush1.bf16.msra.mxu0 %v3998_v13  ;;  %2588 = vmatprep.subr.bf16.mxu1 %v3467_v44  ;;  %v680_v44 = vsel %vm679_vm1, %v676_v7, %v3600_v3  ;;  %v777_v3 = vsel %vm776_vm2, %v3714_v30, %v3630_v45  ;;  %v874_v17 = vsel %vm873_vm3, %v3718_v10, %v3633_v57 }
 0x1c9   : > { %1786 = vmatprep.subr.mxu0 %v3999_v6  ;;  %v654_v7 = vmul.f32 %v642_v5, %v583_v4  ;;  %v750_v22 = vmul.f32 %v735_v40, %v681_v48  ;;  %v1030_v45 = vrot.slane %v3768_v50, %v3103_v56  ;;  %v778_v57 = vsel %vm776_vm2, %v3391_v62, %v3714_v30 }
 0x1ca   : > { %v982_v48 = vsel %vm970_vm4, %v3725_v1, %v3647_v60  ;;  %v1026_v62 = vrot.slane %v3732_v47, %v3103_v56  ;;  %v1224_v30 = vrot.slane %v3768_v50, %v3187_v55  ;;  %v971_v60 = vsel %vm970_vm4, %v3464_v36, %v3725_v1 }
 0x1cb   : > { %2590 = vmatpush1.bf16.msra.mxu1 %v3462_v29  ;;  %v832_v29 = vrot.slane %v3732_v47, %v3042_v8  ;;  %v653_v8 = vmul.f32 %v638_v46, %v584_v59  ;;  %v1042_v59 = vmul.f32 %v1030_v45, %v982_v48  ;;  %v1176_v55 = vsel %vm1164_vm6, %v3748_v18, %v3682_v23  ;;  %v1260_v18 = vpop.permute.xlu0 %1259 }
 0x1cc   : > { %1787 = vmatpush1.msra.mxu0 %v4000_v26  ;;  %2592 = vmatprep.subr.bf16.mxu1 %v3521_v52  ;;  %v751_v52 = vmul.f32 %v739_v14, %v680_v44  ;;  %v1041_v1 = vmul.f32 %v1026_v62, %v971_v60 }
 0x1cd   : > { %2564 = vmatprep.subr.bf16.mxu0 %v3991_v19  ;;  %2421 = vmatmul.mubr.msk.f32.vlgmr.msra.gmra.mrb[2].mxu0 %vm1337_vm8, %v3672_v32  ;;  %v929_v19 = vrot.slane %v3732_v47, %v3049_v12  ;;  %v848_v32 = vmul.f32 %v836_v15, %v777_v3  ;;  %v875_v12 = vsel %vm873_vm3, %v3431_v2, %v3718_v10 }
 0x1ce   : > { %2566 = vmatpush1.bf16.msra.mxu0 %v3992_v58  ;;  %1981 = vmatprep.mubr.f32.mxu0 %v3983_v0  ;;  %v945_v58 = vmul.f32 %v933_v35, %v874_v17  ;;  %v2611_v2 = vpack.c.bf16 %v751_v52, %v654_v7  ;;  %v2613_v10 = vpack.c.bf16 %v750_v22, %v653_v8 }
 0x1cf   : > { %2568 = vmatprep.subr.bf16.mxu0 %v3993_v25  ;;  %2594 = vmatpush1.bf16.msra.mxu1 %v3517_v63  ;;  %v2423_v63 = vld [vmem:[%s3926_s5 + $0x10] sm:$0xff]  ;;  %v944_v25 = vmul.f32 %v929_v19, %v875_v12  ;;  %v1079_v47 = vsel %vm1067_vm5, %v3727_v37, %v3679_v42  ;;  %v2619_v23 = vpack.c.bf16 %v1042_v59, %v2818_v11  ;;  %v2413_v42 = vld [vmem:[%s3924_s3 + $0xb8] ss:$0 sm:$0xff] }
 0x1d0   : > { %2004 = vmatprep.subr.mxu1 %v3564_v33  ;;  %v847_v33 = vmul.f32 %v832_v29, %v778_v57  ;;  %v2615_v56 = vpack.c.bf16 %v945_v58, %v848_v32  ;;  %v1273_v37 = vsel %vm1261_vm7, %v1260_v18, %v3698_v9  ;;  %v4005_v9 = vpack.c.bf16 %v3758_v51, %v3756_v53 }
 0x1d2   : > { %2570 = vmatpush1.bf16.msra.mxu0 %v3994_v49  ;;  %v2617_v36 = vpack.c.bf16 %v944_v25, %v847_v33  ;;  %v1236_v49 = vmul.f32 %v1224_v30, %v1176_v55 }
 0x1d3   : > { %2572 = vmatprep.subr.bf16.mxu0 %v3995_v61  ;;  %2005 = vmatpush1.msra.mxu1 %v3562_v39  ;;  %v1127_v39 = vrot.slane %v3768_v50, %v3180_v54  ;;  %v2621_v54 = vpack.c.bf16 %v1041_v1, %v2818_v11  ;;  %v2412_v11 = vld [vmem:[%s3924_s3 + $0xb0] ss:$0 sm:$0xff]  ;;  %v1262_v50 = vsel %vm1261_vm7, %v3578_v28, %v1260_v18 }
 0x1d4   : > { %2425 = vmatmul.mubr.msk.f32.vlgmr.msra.gmra.mrb[0].mxu1 %vm1337_vm8, %v2423_v63  ;;  %2612 = vmatprep.subr.bf16.mxu1 %v2611_v2  ;;  %v1332_v46 = vmul.f32 %v2412_v11, %v1262_v50 }
 0x1d5   : > { %2614 = vmatpush1.bf16.msra.mxu1 %v2613_v10  ;;  %2194 = vmatprep.mubr.f32.mxu1 %v3983_v0  ;;  %v1139_v61 = vmul.f32 %v1127_v39, %v1079_v47  ;;  %v2227_v53 = vpop.permute.xlu0 %2226 }
 0x1d6   : > { %2574 = vmatpush1.bf16.msra.mxu0 %v3996_v41  ;;  %2616 = vmatprep.subr.bf16.mxu1 %v2615_v56 }
 0x1d7   : > { %2576 = vmatprep.subr.bf16.mxu0 %v3997_v20  ;;  %v2623_v41 = vpack.c.bf16 %v1236_v49, %v1139_v61  ;;  %v4003_v20 = vld [vmem:[#allocation19_spill] sm:$0xff] }
 0x1d9   : > { %2618 = vmatpush1.bf16.msra.mxu1 %v2617_v36 }
 0x1da   : > { %2578 = vmatpush1.bf16.msra.mxu0 %v3998_v13  ;;  %2620 = vmatprep.subr.bf16.mxu1 %v2619_v23  ;;  %v1333_v13 = vmul.f32 %v2413_v42, %v1273_v37 }
 0x1db   : > { %1933 = vmatprep.subr.mxu0 %v3999_v6  ;;  %v4004_v6 = vld [vmem:[#allocation20_spill] sm:$0xff] }
 0x1dd   : > { %2622 = vmatpush1.bf16.msra.mxu1 %v2621_v54 }
 0x1de   : > { %1934 = vmatpush1.msra.mxu0 %v4000_v26  ;;  %2624 = vmatprep.subr.bf16.mxu1 %v2623_v41 }
 0x1df   : > { %2424 = vmatmul.mubr.msk.f32.vlgmr.msra.gmra.mrb[0].mxu0 %vm1337_vm8, %v2423_v63  ;;  %2596 = vmatprep.subr.bf16.mxu0 %v4003_v20 }
 0x1e0   : > { %2598 = vmatpush1.bf16.msra.mxu0 %v4004_v6  ;;  %2123 = vmatprep.mubr.f32.mxu0 %v3983_v0  ;;  %v4007_v0 = vld [vmem:[#allocation22_spill] sm:$0xff] }
 0x1e1   : > { %2600 = vmatprep.subr.bf16.mxu0 %v3448_v31  ;;  %2626 = vmatpush1.bf16.msra.mxu1 %v4005_v9 }
 0x1e2   : > { %2146 = vmatprep.subr.mxu1 %v1333_v13 }
 0x1e4   : > { %2602 = vmatpush1.bf16.msra.mxu0 %v3446_v43 }
 0x1e5   : > { %2604 = vmatprep.subr.bf16.mxu0 %v3480_v16  ;;  %2147 = vmatpush1.msra.mxu1 %v1332_v46 }
 0x1e6   : > { %2427 = vmatmul.mubr.msk.f32.vlgmr.msra.gmra.mrb[2].mxu1 %vm1337_vm8, %v2423_v63 }
 0x1e8   : > { %2606 = vmatpush1.bf16.msra.mxu0 %v4006_v24 }
 0x1e9   : > { %2608 = vmatprep.subr.bf16.mxu0 %v3541_v38 }
 0x1ec   : > { %2610 = vmatpush1.bf16.msra.mxu0 %v3535_v34 }
 0x1ed   : > { %2075 = vmatprep.subr.mxu0 %v3590_v21 }
 0x1f0   : > { %2076 = vmatpush1.msra.mxu0 %v4007_v0 }
 0x1f1   : > { %2426 = vmatmul.mubr.msk.f32.vlgmr.msra.gmra.mrb[2].mxu0 %vm1337_vm8, %v2423_v63  ;;  %v2213_v31 = vpop.permute.xlu1 %2212 }
 0x2a7   : > { %v2054_v43 = vpop.f32.mrb[0].mxu1 }
 0x2a8   : > { %v2217_v28 = vmul.f32 %v2213_v31, %v2054_v43  ;;  %v2056_v16 = vpop.f32.mrb[1].mxu1 }
 0x2a9   : > { %v2218_v51 = vmul.f32 %v2213_v31, %v2056_v16 }
 0x2aa   : > { %v2231_v5 = vadd.f32 %v2227_v53, %v2217_v28 }
 0x2ab   : > { %v2232_v34 = vadd.f32 %v2227_v53, %v2218_v51 }
 0x2ac   : > { %v2239_v38 = vmax.f32 %v2231_v5, 0.0 }
 0x2ad   : > { %v2240_v21 = vmax.f32 %v2232_v34, 0.0 }
 0x2ae   : > { %2247 = vst [vmem:[%s3902_s25 + $0x10] sm:$0xff] %v2239_v38 }
 0x2af   : > { %2248 = vst [vmem:[%s3902_s25 + $0x18] sm:$0xff] %v2240_v21 }
 0x2b2   : > { %v1983_v40 = vpop.f32.mrb[0].mxu0 }
 0x2b3   : > { %v2215_v14 = vmul.f32 %v2213_v31, %v1983_v40  ;;  %v1985_v4 = vpop.f32.mrb[1].mxu0 }
 0x2b4   : > { %v2216_v44 = vmul.f32 %v2213_v31, %v1985_v4 }
 0x2b5   : > { %v2229_v15 = vadd.f32 %v2227_v53, %v2215_v14 }
 0x2b6   : > { %v2230_v26 = vadd.f32 %v2227_v53, %v2216_v44 }
 0x2b7   : > { %v2237_v27 = vmax.f32 %v2229_v15, 0.0 }
 0x2b8   : > { %v2238_v35 = vmax.f32 %v2230_v26, 0.0 }
 0x2b9   : > { %2245 = vst [vmem:[%s3902_s25] sm:$0xff] %v2237_v27  ;;  %v2196_v29 = vpop.f32.mrb[2].mxu1 }
 0x2ba   : > { %2246 = vst [vmem:[%s3902_s25 + $0x8] sm:$0xff] %v2238_v35  ;;  %v2221_v3 = vmul.f32 %v2213_v31, %v2196_v29  ;;  %v2198_v17 = vpop.f32.mrb[3].mxu1 }
 0x2bb   : > { %v2222_v7 = vmul.f32 %v2213_v31, %v2198_v17 }
 0x2bc   : > { %v2235_v52 = vadd.f32 %v2227_v53, %v2221_v3 }
 0x2bd   : > { %v2236_v19 = vadd.f32 %v2227_v53, %v2222_v7 }
 0x2be   : > { %v2243_v8 = vmax.f32 %v2235_v52, 0.0 }
 0x2bf   : > { %v2244_v22 = vmax.f32 %v2236_v19, 0.0 }
 0x2c0   : > { %2251 = vst [vmem:[%s3902_s25 + $0x30] sm:$0xff] %v2243_v8 }
 0x2c1   : > { %2252 = vst [vmem:[%s3902_s25 + $0x38] sm:$0xff] %v2244_v22 }
 0x2c4   : > { %v2125_v45 = vpop.f32.mrb[2].mxu0 }
 0x2c5   : > { %v2219_v57 = vmul.f32 %v2213_v31, %v2125_v45  ;;  %v2127_v32 = vpop.f32.mrb[3].mxu0 }
 0x2c6   : > { %v2220_v12 = vmul.f32 %v2213_v31, %v2127_v32 }
 0x2c7   : > { %v2233_v58 = vadd.f32 %v2227_v53, %v2219_v57 }
 0x2c8   : > { %v2234_v48 = vadd.f32 %v2227_v53, %v2220_v12 }
 0x2c9   : > { %v2241_v63 = vmax.f32 %v2233_v58, 0.0 }
 0x2ca   : > { %v2242_v62 = vmax.f32 %v2234_v48, 0.0 }
 0x2cb   : > { %2249 = vst [vmem:[%s3902_s25 + $0x20] sm:$0xff] %v2241_v63 }
 0x2cc   : > { %2250 = vst [vmem:[%s3902_s25 + $0x28] sm:$0xff] %v2242_v62 }
 0x2cd PF: > { %s18_s27 = sadd.s32 1, %s2701_s27   ;;  %s4008_s26 = smov %s2697_s2 }
 0x2ce   : > { %p15_p5 = scmp.ge.s32.totalorder %s18_s27, 4   ;;  %s4009_s2 = smov %s4011_s28 }
 0x2d0   :  { %17 = sbr.rel (!%p15_p5) target bundleno = 2 (0x2), region = 93 }

</bundles_post_ra>
